<compile_context>
chip_gen: v6e
topology: v6e:2x2x1
jax: 0.10.0
libtpu: 0.0.40
codegen_flags: <defaults>
</compile_context>

<pallas_src>
import functools
import math

import jax
import jax.numpy as jnp
from jax import lax
from jax.experimental import pallas as pl
from jax.experimental.pallas import tpu as pltpu

_HP = jax.lax.Precision.HIGHEST
_BF16 = jnp.bfloat16
_F32 = jnp.float32


def _hardswish(x):
    return x * jnp.clip(x + 3.0, 0.0, 6.0) * (1.0 / 6.0)


# ----------------------------- fused Pallas kernel ---------------------------

def _pooling_block_kernel(x_ref, sel_ref, wq_ref, bq_ref, wk_ref, bk_ref,
                          wv_ref, bv_ref, ab_ref, wp_ref, bp_ref,
                          w1_ref, b1_ref, w2_ref, b2_ref, o_ref,
                          *, bt, nq, nk, heads, qk, vd):
    """BT batch elements per grid step; all intermediates stay in VMEM/vregs."""
    x = x_ref[...]
    x = x.reshape(bt * nk, x.shape[-1])                      # bf16 (BT*Nk, Cin)

    # Stride-2 1x1-conv input rows == one-hot row selection, done on the MXU
    # with a precomputed block-diagonal (BT*Nq, BT*Nk) selector (exact).
    xq = jnp.dot(sel_ref[...], x, preferred_element_type=_F32).astype(_BF16)

    # Q/K/V projections (1x1 conv + BN folded into W, b); BT folded into M.
    # bf16 MXU operands, f32 accumulation.  qk**-0.5 already folded into wq/bq.
    q = jnp.dot(xq, wq_ref[...], preferred_element_type=_F32) + bq_ref[...]
    k = jnp.dot(x, wk_ref[...], preferred_element_type=_F32) + bk_ref[...]
    v = jnp.dot(x, wv_ref[...], preferred_element_type=_F32) + bv_ref[...]

    q3 = q.reshape(bt, nq, heads * qk)      # leading-dim splits: free relayouts
    k3 = k.reshape(bt, nk, heads * qk)
    v3 = v.reshape(bt, nk, heads * vd)

    # Per-head attention; heads is small & static -> unrolled.  Each head is a
    # batched-over-BT matmul, so the fixed MXU push/pop cost is amortised by BT.
    head_outs = []
    for h in range(heads):
        qh = q3[:, :, h * qk:(h + 1) * qk].astype(_BF16)     # (BT, Nq, qk)
        kh = k3[:, :, h * qk:(h + 1) * qk].astype(_BF16)     # (BT, Nk, qk)
        vh = v3[:, :, h * vd:(h + 1) * vd].astype(_BF16)     # (BT, Nk, vd)
        s = jnp.einsum('bqd,bkd->bqk', qh, kh,
                       preferred_element_type=_F32)          # (BT, Nq, Nk)
        s = s + ab_ref[h]                                    # rel-pos bias (f32)
        m = jnp.max(s, axis=-1, keepdims=True)
        p = jnp.exp(s - m)
        p = p / jnp.sum(p, axis=-1, keepdims=True)           # exact softmax
        head_outs.append(jnp.einsum('bqk,bkd->bqd', p.astype(_BF16), vh,
                                    preferred_element_type=_F32))
    # (BT, Nq, heads*vd) -> (BT*Nq, heads*vd): lane-dense slab feeds the MXU.
    attn = jnp.concatenate(head_outs, axis=-1).reshape(bt * nq, heads * vd)

    # Hardswish -> projection ConvNorm (element-wise in f32: safe on v5e).
    a = _hardswish(attn).astype(_BF16)
    proj = jnp.dot(a, wp_ref[...], preferred_element_type=_F32) + bp_ref[...]

    # Feed-forward: ConvNorm -> Hardswish -> ConvNorm, plus residual.
    h1 = _hardswish(
        jnp.dot(proj.astype(_BF16), w1_ref[...], preferred_element_type=_F32)
        + b1_ref[...])
    ff = (jnp.dot(h1.astype(_BF16), w2_ref[...], preferred_element_type=_F32)
          + b2_ref[...])
    o_ref[...] = (ff + proj).reshape(bt, nq, -1).astype(o_ref.dtype)


# ---------------------------------- wrapper -----------------------------------

def _pick_block_batch(batch, requested=None):
    if requested is not None:
        assert batch % requested == 0
        return requested
    # Largest divisor of `batch` <= 16: fills the MXU M dimension (BT*Nq >= 256
    # on v6e/v7x for typical batches) while amortising per-grid-step overhead;
    # for large batches the grid stays >= 2 so both v7x TensorCores get work.
    for bt in range(min(batch, 16), 0, -1):
        if batch % bt == 0:
            return bt
    return 1


def pooling_blocks_pallas(x_nchw, kparams, cfg, *, block_batch=None):
    B, Cin, H, W = x_nchw.shape
    heads, qk, vd = cfg["heads"], cfg["qk"], cfg["vd"]
    out_dim, hidden = cfg["out_dim"], cfg["hidden"]
    Hq, Wq = -(-H // 2), -(-W // 2)
    Nk, Nq = H * W, Hq * Wq
    BT = _pick_block_batch(B, block_batch)
    dq = heads * qk
    dv = heads * vd

    # NCHW -> channels-last sequence, shipped in bf16 (one fused XLA op).
    x_seq = jnp.transpose(x_nchw, (0, 2, 3, 1)).reshape(B, Nk, Cin).astype(_BF16)

    # Block-diagonal one-hot selector extracting the stride-2 query rows of the
    # (BT*Nk, Cin) slab inside the kernel (replaces the wrapper x_q slice/DMA).
    qrows = (jnp.arange(0, H, 2)[:, None] * W
             + jnp.arange(0, W, 2)[None, :]).reshape(-1)              # (Nq,)
    sel = jax.nn.one_hot(qrows, Nk, dtype=_BF16)                      # (Nq, Nk)
    sel_bt = jnp.kron(jnp.eye(BT, dtype=_BF16), sel)                  # (BT*Nq, BT*Nk)

    kernel = functools.partial(_pooling_block_kernel, bt=BT, nq=Nq, nk=Nk,
                               heads=heads, qk=qk, vd=vd)
    const2 = lambda g: (0, 0)
    const3 = lambda g: (0, 0, 0)
    out = pl.pallas_call(
        kernel,
        out_shape=jax.ShapeDtypeStruct((B, Nq, out_dim), jnp.float32),
        grid=(B // BT,),
        in_specs=[
            pl.BlockSpec((BT, Nk, Cin), lambda g: (g, 0, 0)),         # x (bf16)
            pl.BlockSpec((BT * Nq, BT * Nk), const2),                 # selector
            pl.BlockSpec((Cin, dq), const2),                          # Wq*scale (bf16)
            pl.BlockSpec((1, dq), const2),                            # bq*scale
            pl.BlockSpec((Cin, dq), const2),                          # Wk (bf16)
            pl.BlockSpec((1, dq), const2),                            # bk
            pl.BlockSpec((Cin, dv), const2),                          # Wv (bf16)
            pl.BlockSpec((1, dv), const2),                            # bv
            pl.BlockSpec((heads, Nq, Nk), const3),                    # rel-pos bias
            pl.BlockSpec((dv, out_dim), const2),                      # Wproj (bf16)
            pl.BlockSpec((1, out_dim), const2),                       # bproj
            pl.BlockSpec((out_dim, hidden), const2),                  # Wff1 (bf16)
            pl.BlockSpec((1, hidden), const2),                        # bff1
            pl.BlockSpec((hidden, out_dim), const2),                  # Wff2 (bf16)
            pl.BlockSpec((1, out_dim), const2),                       # bff2
        ],
        out_specs=pl.BlockSpec((BT, Nq, out_dim), lambda g: (g, 0, 0)),
        compiler_params=pltpu.CompilerParams(
            dimension_semantics=("parallel",)),
    )(x_seq, sel_bt, kparams["wq"], kparams["bq"], kparams["wk"], kparams["bk"],
      kparams["wv"], kparams["bv"], kparams["attn_bias"],
      kparams["wproj"], kparams["bproj"], kparams["wff1"], kparams["bff1"],
      kparams["wff2"], kparams["bff2"])

    # NCHW at the module boundary to match the PyTorch spec.
    # TODO(synk): NHWC/sequence-native callers can consume `out` directly and
    # skip this reshape+transpose entirely.
    return out.reshape(B, Hq, Wq, out_dim).transpose(0, 3, 1, 2)


# ------------------------- parameter construction -----------------------------

def make_convnorm_params(key, cin, cout, eps=1e-5):
    """Fold 1x1 Conv(bias=False) + BatchNorm (eval) into (Cin,Cout) W, (1,Cout) b."""
    k1, k2, k3, k4, k5 = jax.random.split(key, 5)
    w = jax.random.normal(k1, (cout, cin), jnp.float32) * (1.0 / math.sqrt(cin))
    gamma = 1.0 + 0.1 * jax.random.normal(k2, (cout,), jnp.float32)
    beta = 0.1 * jax.random.normal(k3, (cout,), jnp.float32)
    mean = 0.1 * jax.random.normal(k4, (cout,), jnp.float32)
    var = jnp.abs(jax.random.normal(k5, (cout,), jnp.float32)) + 0.5
    s = gamma / jnp.sqrt(var + eps)
    w_fold = (w * s[:, None]).T                    # (cin, cout)
    b_fold = (beta - mean * s)[None, :]            # (1, cout)
    return w_fold.astype(jnp.float32), b_fold.astype(jnp.float32)


def relative_position_index(H, W, stride):
    qh = jnp.arange(0, H, stride)
    qw = jnp.arange(0, W, stride)
    kh = jnp.arange(H)
    kw = jnp.arange(W)
    qc = jnp.stack(jnp.meshgrid(qh, qw, indexing="ij")).reshape(2, -1)   # (2, Nq)
    kc = jnp.stack(jnp.meshgrid(kh, kw, indexing="ij")).reshape(2, -1)   # (2, Nk)
    rel = jnp.abs(qc[:, :, None] - kc[:, None, :]).transpose(1, 2, 0)    # (Nq, Nk, 2)
    rel = rel.at[:, :, 0].multiply(W)
    return rel.sum(-1)                                                    # (Nq, Nk)


def prepare_kernel_params(raw, H, W, cfg):
    """Precompute rel-pos bias gather, fold the attention scale into Wq/bq,
    cast matmul weights to bf16."""
    heads, qk = cfg["heads"], cfg["qk"]
    Hq, Wq = -(-H // 2), -(-W // 2)
    Nk, Nq = H * W, Hq * Wq
    scale = float(qk) ** -0.5
    rel_idx = relative_position_index(H, W, 2)
    attn_bias = raw["bias_table"][:, rel_idx.reshape(-1)].reshape(heads, Nq, Nk)
    wq, bq = raw["q"]
    wk, bk = raw["k"]
    wv, bv = raw["v"]
    wp, bp = raw["proj"]
    w1, b1 = raw["ff1"]
    w2, b2 = raw["ff2"]
    return {
        "wq": (wq * scale).astype(_BF16), "bq": bq * scale,   # scale folded
        "wk": wk.astype(_BF16), "bk": bk,
        "wv": wv.astype(_BF16), "bv": bv,
        "attn_bias": attn_bias,
        "wproj": wp.astype(_BF16), "bproj": bp,
        "wff1": w1.astype(_BF16), "bff1": b1,
        "wff2": w2.astype(_BF16), "bff2": b2,
    }


# ----------------------------- pure-JAX reference ------------------------------

def pooling_blocks_reference(x, raw, cfg, *, bf16_matmuls):
    """Faithful NCHW reference.  bf16_matmuls=True emulates the kernel's bf16
    MXU operands by rounding operands to bf16 and accumulating in f32 — it never
    issues a bf16 x bf16 dot (unsupported by the eager XLA:CPU DotThunk)."""
    B, Cin, H, W = x.shape
    heads, qk, vd = cfg["heads"], cfg["qk"], cfg["vd"]
    Hq, Wq = -(-H // 2), -(-W // 2)
    Nk, Nq = H * W, Hq * Wq
    scale = float(qk) ** -0.5

    if bf16_matmuls:
        def mm(eq, a, b):
            a = a.astype(_BF16).astype(_F32)
            b = b.astype(_BF16).astype(_F32)
            return jnp.einsum(eq, a, b, precision=_HP)
    else:
        def mm(eq, a, b):
            return jnp.einsum(eq, a, b, precision=_HP)

    def convnorm(t, w, b):
        return mm("bchw,co->bohw", t, w) + b.reshape(1, -1, 1, 1)

    wq, bq = raw["q"]
    wk, bk = raw["k"]
    wv, bv = raw["v"]
    q = convnorm(x[:, :, ::2, ::2], wq, bq).reshape(B, heads, qk, Nq).transpose(0, 1, 3, 2)
    k = convnorm(x, wk, bk).reshape(B, heads, qk, Nk)
    v = convnorm(x, wv, bv).reshape(B, heads, vd, Nk).transpose(0, 1, 3, 2)

    rel_idx = relative_position_index(H, W, 2)
    bias = raw["bias_table"][:, rel_idx.reshape(-1)].reshape(1, heads, Nq, Nk)

    sim = mm("bhqd,bhdk->bhqk", q, k) * scale + bias
    attn = jax.nn.softmax(sim, axis=-1)
    o = mm("bhqk,bhkv->bhqv", attn, v)
    o = o.transpose(0, 1, 3, 2).reshape(B, heads * vd, Hq, Wq)
    o = _hardswish(o)
    o = convnorm(o, *raw["proj"])
    identity = o
    f = _hardswish(convnorm(o, *raw["ff1"]))
    f = convnorm(f, *raw["ff2"])
    return f + identity


# ------------------------------------ main --------------------------------------

if __name__ == "__main__":
    # Small config consistent with the module: in_dim=32, qk=8 -> heads=4,
    # out_dim=64 -> hidden=128, v_head_dim=4*qk=32 (heads*vd=128), feature=(8,8).
    B, Cin, H, W = 2, 32, 8, 8
    qk = 8
    heads = Cin // qk
    out_dim = 64
    hidden = 2 * out_dim
    vd = 4 * qk
    cfg = dict(heads=heads, qk=qk, vd=vd, out_dim=out_dim, hidden=hidden)

    key = jax.random.PRNGKey(0)
    keys = jax.random.split(key, 8)
    x = jax.random.normal(keys[0], (B, Cin, H, W), jnp.float32)

    raw = {
        "q": make_convnorm_params(keys[1], Cin, heads * qk),
        "k": make_convnorm_params(keys[2], Cin, heads * qk),
        "v": make_convnorm_params(keys[3], Cin, heads * vd),
        "proj": make_convnorm_params(keys[4], heads * vd, out_dim),
        "ff1": make_convnorm_params(keys[5], out_dim, hidden),
        "ff2": make_convnorm_params(keys[6], hidden, out_dim),
        # attention_bias_table is zeros in __init__; use small deterministic
        # values here so the bias path is exercised.
        "bias_table": 0.1 * jax.random.normal(keys[7], (heads, H * W), jnp.float32),
    }
    kparams = prepare_kernel_params(raw, H, W, cfg)

    fwd = jax.jit(lambda xx, pp: pooling_blocks_pallas(xx, pp, cfg))
    out = jax.block_until_ready(fwd(x, kparams))
    assert out.shape == (B, out_dim, math.ceil(H / 2), math.ceil(W / 2)), out.shape

    # Matched-precision reference (bf16-rounded operands, f32 accumulation).
    ref_bf16_fn = jax.jit(functools.partial(pooling_blocks_reference,
                                            cfg=cfg, bf16_matmuls=True))
    ref_bf16 = jax.block_until_ready(ref_bf16_fn(x, raw))
    err_matched = float(jnp.max(jnp.abs(out - ref_bf16)))
    assert err_matched < 5e-2, f"max abs error vs matched reference: {err_matched}"

    # Sanity check vs full-f32 HIGHEST reference (bf16 MXU operands are an
    # intentional precision trade-off requested by the performance review).
    ref_f32_fn = jax.jit(functools.partial(pooling_blocks_reference,
                                           cfg=cfg, bf16_matmuls=False))
    ref_f32 = jax.block_until_ready(ref_f32_fn(x, raw))
    err_f32 = float(jnp.max(jnp.abs(out - ref_f32)))
    assert err_f32 < 5e-1, f"max abs error vs f32 reference: {err_f32}"

    print("KERNEL_OK")
</pallas_src>

<mosaic_0001>
module attributes {stable_mosaic.version = 11 : i64} {
  func.func @_pooling_block_kernel(%arg0: i32, %arg1: memref<2x64x32xbf16, #tpu.memory_space<vmem>>, %arg2: memref<32x128xbf16, #tpu.memory_space<vmem>>, %arg3: memref<32x32xbf16, #tpu.memory_space<vmem>>, %arg4: memref<1x32xf32, #tpu.memory_space<vmem>>, %arg5: memref<32x32xbf16, #tpu.memory_space<vmem>>, %arg6: memref<1x32xf32, #tpu.memory_space<vmem>>, %arg7: memref<32x128xbf16, #tpu.memory_space<vmem>>, %arg8: memref<1x128xf32, #tpu.memory_space<vmem>>, %arg9: memref<4x16x64xf32, #tpu.memory_space<vmem>>, %arg10: memref<128x64xbf16, #tpu.memory_space<vmem>>, %arg11: memref<1x64xf32, #tpu.memory_space<vmem>>, %arg12: memref<64x128xbf16, #tpu.memory_space<vmem>>, %arg13: memref<1x128xf32, #tpu.memory_space<vmem>>, %arg14: memref<128x64xbf16, #tpu.memory_space<vmem>>, %arg15: memref<1x64xf32, #tpu.memory_space<vmem>>, %arg16: memref<2x16x64xf32, #tpu.memory_space<vmem>>) attributes {dimension_semantics = [#tpu.dimension_semantics<parallel>], iteration_bounds = array<i64: 1>, scalar_prefetch = 0 : i64, scratch_operands = 0 : i64, tpu.core_type = #tpu.core_type<tc>, window_params = [{transform_indices = @transform_0, window_bounds = array<i64: 2, 64, 32>}, {pipeline_mode = #tpu.pipeline_mode<synchronous>, transform_indices = @transform_1, window_bounds = array<i64: 32, 128>}, {pipeline_mode = #tpu.pipeline_mode<synchronous>, transform_indices = @transform_2, window_bounds = array<i64: 32, 32>}, {pipeline_mode = #tpu.pipeline_mode<synchronous>, transform_indices = @transform_3, window_bounds = array<i64: 1, 32>}, {pipeline_mode = #tpu.pipeline_mode<synchronous>, transform_indices = @transform_4, window_bounds = array<i64: 32, 32>}, {pipeline_mode = #tpu.pipeline_mode<synchronous>, transform_indices = @transform_5, window_bounds = array<i64: 1, 32>}, {pipeline_mode = #tpu.pipeline_mode<synchronous>, transform_indices = @transform_6, window_bounds = array<i64: 32, 128>}, {pipeline_mode = #tpu.pipeline_mode<synchronous>, transform_indices = @transform_7, window_bounds = array<i64: 1, 128>}, {pipeline_mode = #tpu.pipeline_mode<synchronous>, transform_indices = @transform_8, window_bounds = array<i64: 4, 16, 64>}, {pipeline_mode = #tpu.pipeline_mode<synchronous>, transform_indices = @transform_9, window_bounds = array<i64: 128, 64>}, {pipeline_mode = #tpu.pipeline_mode<synchronous>, transform_indices = @transform_10, window_bounds = array<i64: 1, 64>}, {pipeline_mode = #tpu.pipeline_mode<synchronous>, transform_indices = @transform_11, window_bounds = array<i64: 64, 128>}, {pipeline_mode = #tpu.pipeline_mode<synchronous>, transform_indices = @transform_12, window_bounds = array<i64: 1, 128>}, {pipeline_mode = #tpu.pipeline_mode<synchronous>, transform_indices = @transform_13, window_bounds = array<i64: 128, 64>}, {pipeline_mode = #tpu.pipeline_mode<synchronous>, transform_indices = @transform_14, window_bounds = array<i64: 1, 64>}, {transform_indices = @transform_15, window_bounds = array<i64: 2, 16, 64>}]} {
    %c0 = arith.constant 0 : index
    %c0_0 = arith.constant 0 : index
    %c0_1 = arith.constant 0 : index
    %0 = vector.load %arg1[%c0, %c0_0, %c0_1] : memref<2x64x32xbf16, #tpu.memory_space<vmem>>, vector<2x64x32xbf16>
    %1 = vector.shape_cast %0 : vector<2x64x32xbf16> to vector<128x32xbf16>
    %c0_2 = arith.constant 0 : index
    %c0_3 = arith.constant 0 : index
    %2 = vector.load %arg2[%c0_2, %c0_3] : memref<32x128xbf16, #tpu.memory_space<vmem>>, vector<32x128xbf16>
    %cst = arith.constant dense<0.000000e+00> : vector<32x32xf32>
    %3 = tpu.matmul %2, %1, %cst {dimension_numbers = #tpu.dot_dimension_numbers<[1], [0], [0], [1], [0, 0, 1, 1], [], []>} : vector<32x128xbf16>, vector<128x32xbf16>, vector<32x32xf32> -> vector<32x32xf32>
    %4 = arith.truncf %3 : vector<32x32xf32> to vector<32x32xbf16>
    %c0_4 = arith.constant 0 : index
    %c0_5 = arith.constant 0 : index
    %5 = vector.load %arg3[%c0_4, %c0_5] : memref<32x32xbf16, #tpu.memory_space<vmem>>, vector<32x32xbf16>
    %cst_6 = arith.constant dense<0.000000e+00> : vector<32x32xf32>
    %6 = tpu.matmul %4, %5, %cst_6 {dimension_numbers = #tpu.dot_dimension_numbers<[1], [0], [0], [1], [0, 0, 1, 1], [], []>} : vector<32x32xbf16>, vector<32x32xbf16>, vector<32x32xf32> -> vector<32x32xf32>
    %c0_7 = arith.constant 0 : index
    %c0_8 = arith.constant 0 : index
    %7 = vector.load %arg4[%c0_7, %c0_8] : memref<1x32xf32, #tpu.memory_space<vmem>>, vector<1x32xf32>
    %8 = vector.broadcast %7 : vector<1x32xf32> to vector<32x32xf32>
    %9 = arith.addf %6, %8 : vector<32x32xf32>
    %c0_9 = arith.constant 0 : index
    %c0_10 = arith.constant 0 : index
    %10 = vector.load %arg5[%c0_9, %c0_10] : memref<32x32xbf16, #tpu.memory_space<vmem>>, vector<32x32xbf16>
    %cst_11 = arith.constant dense<0.000000e+00> : vector<128x32xf32>
    %11 = tpu.matmul %1, %10, %cst_11 {dimension_numbers = #tpu.dot_dimension_numbers<[1], [0], [0], [1], [0, 0, 1, 1], [], []>} : vector<128x32xbf16>, vector<32x32xbf16>, vector<128x32xf32> -> vector<128x32xf32>
    %c0_12 = arith.constant 0 : index
    %c0_13 = arith.constant 0 : index
    %12 = vector.load %arg6[%c0_12, %c0_13] : memref<1x32xf32, #tpu.memory_space<vmem>>, vector<1x32xf32>
    %13 = vector.broadcast %12 : vector<1x32xf32> to vector<128x32xf32>
    %14 = arith.addf %11, %13 : vector<128x32xf32>
    %c0_14 = arith.constant 0 : index
    %c0_15 = arith.constant 0 : index
    %15 = vector.load %arg7[%c0_14, %c0_15] : memref<32x128xbf16, #tpu.memory_space<vmem>>, vector<32x128xbf16>
    %cst_16 = arith.constant dense<0.000000e+00> : vector<128x128xf32>
    %16 = tpu.matmul %1, %15, %cst_16 {dimension_numbers = #tpu.dot_dimension_numbers<[1], [0], [0], [1], [0, 0, 1, 1], [], []>} : vector<128x32xbf16>, vector<32x128xbf16>, vector<128x128xf32> -> vector<128x128xf32>
    %c0_17 = arith.constant 0 : index
    %c0_18 = arith.constant 0 : index
    %17 = vector.load %arg8[%c0_17, %c0_18] : memref<1x128xf32, #tpu.memory_space<vmem>>, vector<1x128xf32>
    %18 = vector.broadcast %17 : vector<1x128xf32> to vector<128x128xf32>
    %19 = arith.addf %16, %18 : vector<128x128xf32>
    %20 = vector.shape_cast %9 : vector<32x32xf32> to vector<2x16x32xf32>
    %21 = vector.shape_cast %14 : vector<128x32xf32> to vector<2x64x32xf32>
    %22 = vector.shape_cast %19 : vector<128x128xf32> to vector<2x64x128xf32>
    %23 = vector.extract_strided_slice %20 {offsets = [0, 0, 0], sizes = [2, 16, 8], strides = [1, 1, 1]} : vector<2x16x32xf32> to vector<2x16x8xf32>
    %24 = arith.truncf %23 : vector<2x16x8xf32> to vector<2x16x8xbf16>
    %25 = vector.extract_strided_slice %21 {offsets = [0, 0, 0], sizes = [2, 64, 8], strides = [1, 1, 1]} : vector<2x64x32xf32> to vector<2x64x8xf32>
    %26 = arith.truncf %25 : vector<2x64x8xf32> to vector<2x64x8xbf16>
    %27 = vector.extract_strided_slice %22 {offsets = [0, 0, 0], sizes = [2, 64, 32], strides = [1, 1, 1]} : vector<2x64x128xf32> to vector<2x64x32xf32>
    %28 = arith.truncf %27 : vector<2x64x32xf32> to vector<2x64x32xbf16>
    "tpu.trace_start"() <{level = 10 : i32, message = "bqd,bkd->bqk"}> : () -> ()
    %cst_19 = arith.constant dense<0.000000e+00> : vector<2x16x64xf32>
    %29 = tpu.matmul %24, %26, %cst_19 {dimension_numbers = #tpu.dot_dimension_numbers<[2], [2], [1], [1], [0, 0, 0, 1, 1, 1], [0], [0]>} : vector<2x16x8xbf16>, vector<2x64x8xbf16>, vector<2x16x64xf32> -> vector<2x16x64xf32>
    "tpu.trace_stop"() : () -> ()
    %c0_20 = arith.constant 0 : index
    %c0_21 = arith.constant 0 : index
    %c0_22 = arith.constant 0 : index
    %30 = vector.load %arg9[%c0_20, %c0_21, %c0_22] : memref<4x16x64xf32, #tpu.memory_space<vmem>>, vector<1x16x64xf32>
    %31 = vector.shape_cast %30 : vector<1x16x64xf32> to vector<16x64xf32>
    %32 = vector.shape_cast %31 : vector<16x64xf32> to vector<1x16x64xf32>
    %33 = vector.broadcast %32 : vector<1x16x64xf32> to vector<2x16x64xf32>
    %34 = arith.addf %29, %33 : vector<2x16x64xf32>
    %cst_23 = arith.constant dense<0xFF800000> : vector<2x16xf32>
    %35 = vector.multi_reduction <maximumf>, %34, %cst_23 [2] : vector<2x16x64xf32> to vector<2x16xf32>
    %36 = vector.shape_cast %35 : vector<2x16xf32> to vector<2x16x1xf32>
    %37 = vector.broadcast %36 : vector<2x16x1xf32> to vector<2x16x64xf32>
    %38 = arith.subf %34, %37 : vector<2x16x64xf32>
    %39 = math.exp %38 : vector<2x16x64xf32>
    %cst_24 = arith.constant dense<0.000000e+00> : vector<2x16xf32>
    %40 = vector.multi_reduction <add>, %39, %cst_24 [2] : vector<2x16x64xf32> to vector<2x16xf32>
    %41 = vector.shape_cast %40 : vector<2x16xf32> to vector<2x16x1xf32>
    %42 = vector.broadcast %41 : vector<2x16x1xf32> to vector<2x16x64xf32>
    %43 = arith.divf %39, %42 : vector<2x16x64xf32>
    %44 = arith.truncf %43 : vector<2x16x64xf32> to vector<2x16x64xbf16>
    "tpu.trace_start"() <{level = 10 : i32, message = "bqk,bkd->bqd"}> : () -> ()
    %cst_25 = arith.constant dense<0.000000e+00> : vector<2x16x32xf32>
    %45 = tpu.matmul %44, %28, %cst_25 {dimension_numbers = #tpu.dot_dimension_numbers<[2], [1], [1], [2], [0, 0, 0, 1, 1, 2], [0], [0]>} : vector<2x16x64xbf16>, vector<2x64x32xbf16>, vector<2x16x32xf32> -> vector<2x16x32xf32>
    "tpu.trace_stop"() : () -> ()
    %46 = vector.extract_strided_slice %20 {offsets = [0, 0, 8], sizes = [2, 16, 8], strides = [1, 1, 1]} : vector<2x16x32xf32> to vector<2x16x8xf32>
    %47 = arith.truncf %46 : vector<2x16x8xf32> to vector<2x16x8xbf16>
    %48 = vector.extract_strided_slice %21 {offsets = [0, 0, 8], sizes = [2, 64, 8], strides = [1, 1, 1]} : vector<2x64x32xf32> to vector<2x64x8xf32>
    %49 = arith.truncf %48 : vector<2x64x8xf32> to vector<2x64x8xbf16>
    %50 = vector.extract_strided_slice %22 {offsets = [0, 0, 32], sizes = [2, 64, 32], strides = [1, 1, 1]} : vector<2x64x128xf32> to vector<2x64x32xf32>
    %51 = arith.truncf %50 : vector<2x64x32xf32> to vector<2x64x32xbf16>
    "tpu.trace_start"() <{level = 10 : i32, message = "bqd,bkd->bqk"}> : () -> ()
    %cst_26 = arith.constant dense<0.000000e+00> : vector<2x16x64xf32>
    %52 = tpu.matmul %47, %49, %cst_26 {dimension_numbers = #tpu.dot_dimension_numbers<[2], [2], [1], [1], [0, 0, 0, 1, 1, 1], [0], [0]>} : vector<2x16x8xbf16>, vector<2x64x8xbf16>, vector<2x16x64xf32> -> vector<2x16x64xf32>
    "tpu.trace_stop"() : () -> ()
    %c1 = arith.constant 1 : index
    %c0_27 = arith.constant 0 : index
    %c0_28 = arith.constant 0 : index
    %53 = vector.load %arg9[%c1, %c0_27, %c0_28] : memref<4x16x64xf32, #tpu.memory_space<vmem>>, vector<1x16x64xf32>
    %54 = vector.shape_cast %53 : vector<1x16x64xf32> to vector<16x64xf32>
    %55 = vector.shape_cast %54 : vector<16x64xf32> to vector<1x16x64xf32>
    %56 = vector.broadcast %55 : vector<1x16x64xf32> to vector<2x16x64xf32>
    %57 = arith.addf %52, %56 : vector<2x16x64xf32>
    %cst_29 = arith.constant dense<0xFF800000> : vector<2x16xf32>
    %58 = vector.multi_reduction <maximumf>, %57, %cst_29 [2] : vector<2x16x64xf32> to vector<2x16xf32>
    %59 = vector.shape_cast %58 : vector<2x16xf32> to vector<2x16x1xf32>
    %60 = vector.broadcast %59 : vector<2x16x1xf32> to vector<2x16x64xf32>
    %61 = arith.subf %57, %60 : vector<2x16x64xf32>
    %62 = math.exp %61 : vector<2x16x64xf32>
    %cst_30 = arith.constant dense<0.000000e+00> : vector<2x16xf32>
    %63 = vector.multi_reduction <add>, %62, %cst_30 [2] : vector<2x16x64xf32> to vector<2x16xf32>
    %64 = vector.shape_cast %63 : vector<2x16xf32> to vector<2x16x1xf32>
    %65 = vector.broadcast %64 : vector<2x16x1xf32> to vector<2x16x64xf32>
    %66 = arith.divf %62, %65 : vector<2x16x64xf32>
    %67 = arith.truncf %66 : vector<2x16x64xf32> to vector<2x16x64xbf16>
    "tpu.trace_start"() <{level = 10 : i32, message = "bqk,bkd->bqd"}> : () -> ()
    %cst_31 = arith.constant dense<0.000000e+00> : vector<2x16x32xf32>
    %68 = tpu.matmul %67, %51, %cst_31 {dimension_numbers = #tpu.dot_dimension_numbers<[2], [1], [1], [2], [0, 0, 0, 1, 1, 2], [0], [0]>} : vector<2x16x64xbf16>, vector<2x64x32xbf16>, vector<2x16x32xf32> -> vector<2x16x32xf32>
    "tpu.trace_stop"() : () -> ()
    %69 = vector.extract_strided_slice %20 {offsets = [0, 0, 16], sizes = [2, 16, 8], strides = [1, 1, 1]} : vector<2x16x32xf32> to vector<2x16x8xf32>
    %70 = arith.truncf %69 : vector<2x16x8xf32> to vector<2x16x8xbf16>
    %71 = vector.extract_strided_slice %21 {offsets = [0, 0, 16], sizes = [2, 64, 8], strides = [1, 1, 1]} : vector<2x64x32xf32> to vector<2x64x8xf32>
    %72 = arith.truncf %71 : vector<2x64x8xf32> to vector<2x64x8xbf16>
    %73 = vector.extract_strided_slice %22 {offsets = [0, 0, 64], sizes = [2, 64, 32], strides = [1, 1, 1]} : vector<2x64x128xf32> to vector<2x64x32xf32>
    %74 = arith.truncf %73 : vector<2x64x32xf32> to vector<2x64x32xbf16>
    "tpu.trace_start"() <{level = 10 : i32, message = "bqd,bkd->bqk"}> : () -> ()
    %cst_32 = arith.constant dense<0.000000e+00> : vector<2x16x64xf32>
    %75 = tpu.matmul %70, %72, %cst_32 {dimension_numbers = #tpu.dot_dimension_numbers<[2], [2], [1], [1], [0, 0, 0, 1, 1, 1], [0], [0]>} : vector<2x16x8xbf16>, vector<2x64x8xbf16>, vector<2x16x64xf32> -> vector<2x16x64xf32>
    "tpu.trace_stop"() : () -> ()
    %c2 = arith.constant 2 : index
    %c0_33 = arith.constant 0 : index
    %c0_34 = arith.constant 0 : index
    %76 = vector.load %arg9[%c2, %c0_33, %c0_34] : memref<4x16x64xf32, #tpu.memory_space<vmem>>, vector<1x16x64xf32>
    %77 = vector.shape_cast %76 : vector<1x16x64xf32> to vector<16x64xf32>
    %78 = vector.shape_cast %77 : vector<16x64xf32> to vector<1x16x64xf32>
    %79 = vector.broadcast %78 : vector<1x16x64xf32> to vector<2x16x64xf32>
    %80 = arith.addf %75, %79 : vector<2x16x64xf32>
    %cst_35 = arith.constant dense<0xFF800000> : vector<2x16xf32>
    %81 = vector.multi_reduction <maximumf>, %80, %cst_35 [2] : vector<2x16x64xf32> to vector<2x16xf32>
    %82 = vector.shape_cast %81 : vector<2x16xf32> to vector<2x16x1xf32>
    %83 = vector.broadcast %82 : vector<2x16x1xf32> to vector<2x16x64xf32>
    %84 = arith.subf %80, %83 : vector<2x16x64xf32>
    %85 = math.exp %84 : vector<2x16x64xf32>
    %cst_36 = arith.constant dense<0.000000e+00> : vector<2x16xf32>
    %86 = vector.multi_reduction <add>, %85, %cst_36 [2] : vector<2x16x64xf32> to vector<2x16xf32>
    %87 = vector.shape_cast %86 : vector<2x16xf32> to vector<2x16x1xf32>
    %88 = vector.broadcast %87 : vector<2x16x1xf32> to vector<2x16x64xf32>
    %89 = arith.divf %85, %88 : vector<2x16x64xf32>
    %90 = arith.truncf %89 : vector<2x16x64xf32> to vector<2x16x64xbf16>
    "tpu.trace_start"() <{level = 10 : i32, message = "bqk,bkd->bqd"}> : () -> ()
    %cst_37 = arith.constant dense<0.000000e+00> : vector<2x16x32xf32>
    %91 = tpu.matmul %90, %74, %cst_37 {dimension_numbers = #tpu.dot_dimension_numbers<[2], [1], [1], [2], [0, 0, 0, 1, 1, 2], [0], [0]>} : vector<2x16x64xbf16>, vector<2x64x32xbf16>, vector<2x16x32xf32> -> vector<2x16x32xf32>
    "tpu.trace_stop"() : () -> ()
    %92 = vector.extract_strided_slice %20 {offsets = [0, 0, 24], sizes = [2, 16, 8], strides = [1, 1, 1]} : vector<2x16x32xf32> to vector<2x16x8xf32>
    %93 = arith.truncf %92 : vector<2x16x8xf32> to vector<2x16x8xbf16>
    %94 = vector.extract_strided_slice %21 {offsets = [0, 0, 24], sizes = [2, 64, 8], strides = [1, 1, 1]} : vector<2x64x32xf32> to vector<2x64x8xf32>
    %95 = arith.truncf %94 : vector<2x64x8xf32> to vector<2x64x8xbf16>
    %96 = vector.extract_strided_slice %22 {offsets = [0, 0, 96], sizes = [2, 64, 32], strides = [1, 1, 1]} : vector<2x64x128xf32> to vector<2x64x32xf32>
    %97 = arith.truncf %96 : vector<2x64x32xf32> to vector<2x64x32xbf16>
    "tpu.trace_start"() <{level = 10 : i32, message = "bqd,bkd->bqk"}> : () -> ()
    %cst_38 = arith.constant dense<0.000000e+00> : vector<2x16x64xf32>
    %98 = tpu.matmul %93, %95, %cst_38 {dimension_numbers = #tpu.dot_dimension_numbers<[2], [2], [1], [1], [0, 0, 0, 1, 1, 1], [0], [0]>} : vector<2x16x8xbf16>, vector<2x64x8xbf16>, vector<2x16x64xf32> -> vector<2x16x64xf32>
    "tpu.trace_stop"() : () -> ()
    %c3 = arith.constant 3 : index
    %c0_39 = arith.constant 0 : index
    %c0_40 = arith.constant 0 : index
    %99 = vector.load %arg9[%c3, %c0_39, %c0_40] : memref<4x16x64xf32, #tpu.memory_space<vmem>>, vector<1x16x64xf32>
    %100 = vector.shape_cast %99 : vector<1x16x64xf32> to vector<16x64xf32>
    %101 = vector.shape_cast %100 : vector<16x64xf32> to vector<1x16x64xf32>
    %102 = vector.broadcast %101 : vector<1x16x64xf32> to vector<2x16x64xf32>
    %103 = arith.addf %98, %102 : vector<2x16x64xf32>
    %cst_41 = arith.constant dense<0xFF800000> : vector<2x16xf32>
    %104 = vector.multi_reduction <maximumf>, %103, %cst_41 [2] : vector<2x16x64xf32> to vector<2x16xf32>
    %105 = vector.shape_cast %104 : vector<2x16xf32> to vector<2x16x1xf32>
    %106 = vector.broadcast %105 : vector<2x16x1xf32> to vector<2x16x64xf32>
    %107 = arith.subf %103, %106 : vector<2x16x64xf32>
    %108 = math.exp %107 : vector<2x16x64xf32>
    %cst_42 = arith.constant dense<0.000000e+00> : vector<2x16xf32>
    %109 = vector.multi_reduction <add>, %108, %cst_42 [2] : vector<2x16x64xf32> to vector<2x16xf32>
    %110 = vector.shape_cast %109 : vector<2x16xf32> to vector<2x16x1xf32>
    %111 = vector.broadcast %110 : vector<2x16x1xf32> to vector<2x16x64xf32>
    %112 = arith.divf %108, %111 : vector<2x16x64xf32>
    %113 = arith.truncf %112 : vector<2x16x64xf32> to vector<2x16x64xbf16>
    "tpu.trace_start"() <{level = 10 : i32, message = "bqk,bkd->bqd"}> : () -> ()
    %cst_43 = arith.constant dense<0.000000e+00> : vector<2x16x32xf32>
    %114 = tpu.matmul %113, %97, %cst_43 {dimension_numbers = #tpu.dot_dimension_numbers<[2], [1], [1], [2], [0, 0, 0, 1, 1, 2], [0], [0]>} : vector<2x16x64xbf16>, vector<2x64x32xbf16>, vector<2x16x32xf32> -> vector<2x16x32xf32>
    "tpu.trace_stop"() : () -> ()
    %115 = tpu.concatenate %45, %68, %91, %114 in 2 : vector<2x16x32xf32>, vector<2x16x32xf32>, vector<2x16x32xf32>, vector<2x16x32xf32> -> vector<2x16x128xf32>
    %116 = vector.shape_cast %115 : vector<2x16x128xf32> to vector<32x128xf32>
    %cst_44 = arith.constant 3.000000e+00 : f32
    %117 = vector.broadcast %cst_44 : f32 to vector<32x128xf32>
    %118 = arith.addf %116, %117 : vector<32x128xf32>
    %cst_45 = arith.constant 0.000000e+00 : f32
    %cst_46 = arith.constant 6.000000e+00 : f32
    %119 = vector.broadcast %cst_45 : f32 to vector<32x128xf32>
    %120 = arith.maximumf %119, %118 : vector<32x128xf32>
    %121 = vector.broadcast %cst_46 : f32 to vector<32x128xf32>
    %122 = arith.minimumf %121, %120 : vector<32x128xf32>
    %123 = arith.mulf %116, %122 : vector<32x128xf32>
    %cst_47 = arith.constant 0.166666672 : f32
    %124 = vector.broadcast %cst_47 : f32 to vector<32x128xf32>
    %125 = arith.mulf %123, %124 : vector<32x128xf32>
    %126 = arith.truncf %125 : vector<32x128xf32> to vector<32x128xbf16>
    %c0_48 = arith.constant 0 : index
    %c0_49 = arith.constant 0 : index
    %127 = vector.load %arg10[%c0_48, %c0_49] : memref<128x64xbf16, #tpu.memory_space<vmem>>, vector<128x64xbf16>
    %cst_50 = arith.constant dense<0.000000e+00> : vector<32x64xf32>
    %128 = tpu.matmul %126, %127, %cst_50 {dimension_numbers = #tpu.dot_dimension_numbers<[1], [0], [0], [1], [0, 0, 1, 1], [], []>} : vector<32x128xbf16>, vector<128x64xbf16>, vector<32x64xf32> -> vector<32x64xf32>
    %c0_51 = arith.constant 0 : index
    %c0_52 = arith.constant 0 : index
    %129 = vector.load %arg11[%c0_51, %c0_52] : memref<1x64xf32, #tpu.memory_space<vmem>>, vector<1x64xf32>
    %130 = vector.broadcast %129 : vector<1x64xf32> to vector<32x64xf32>
    %131 = arith.addf %128, %130 : vector<32x64xf32>
    %132 = arith.truncf %131 : vector<32x64xf32> to vector<32x64xbf16>
    %c0_53 = arith.constant 0 : index
    %c0_54 = arith.constant 0 : index
    %133 = vector.load %arg12[%c0_53, %c0_54] : memref<64x128xbf16, #tpu.memory_space<vmem>>, vector<64x128xbf16>
    %cst_55 = arith.constant dense<0.000000e+00> : vector<32x128xf32>
    %134 = tpu.matmul %132, %133, %cst_55 {dimension_numbers = #tpu.dot_dimension_numbers<[1], [0], [0], [1], [0, 0, 1, 1], [], []>} : vector<32x64xbf16>, vector<64x128xbf16>, vector<32x128xf32> -> vector<32x128xf32>
    %c0_56 = arith.constant 0 : index
    %c0_57 = arith.constant 0 : index
    %135 = vector.load %arg13[%c0_56, %c0_57] : memref<1x128xf32, #tpu.memory_space<vmem>>, vector<1x128xf32>
    %136 = vector.broadcast %135 : vector<1x128xf32> to vector<32x128xf32>
    %137 = arith.addf %134, %136 : vector<32x128xf32>
    %cst_58 = arith.constant 3.000000e+00 : f32
    %138 = vector.broadcast %cst_58 : f32 to vector<32x128xf32>
    %139 = arith.addf %137, %138 : vector<32x128xf32>
    %cst_59 = arith.constant 0.000000e+00 : f32
    %cst_60 = arith.constant 6.000000e+00 : f32
    %140 = vector.broadcast %cst_59 : f32 to vector<32x128xf32>
    %141 = arith.maximumf %140, %139 : vector<32x128xf32>
    %142 = vector.broadcast %cst_60 : f32 to vector<32x128xf32>
    %143 = arith.minimumf %142, %141 : vector<32x128xf32>
    %144 = arith.mulf %137, %143 : vector<32x128xf32>
    %cst_61 = arith.constant 0.166666672 : f32
    %145 = vector.broadcast %cst_61 : f32 to vector<32x128xf32>
    %146 = arith.mulf %144, %145 : vector<32x128xf32>
    %147 = arith.truncf %146 : vector<32x128xf32> to vector<32x128xbf16>
    %c0_62 = arith.constant 0 : index
    %c0_63 = arith.constant 0 : index
    %148 = vector.load %arg14[%c0_62, %c0_63] : memref<128x64xbf16, #tpu.memory_space<vmem>>, vector<128x64xbf16>
    %cst_64 = arith.constant dense<0.000000e+00> : vector<32x64xf32>
    %149 = tpu.matmul %147, %148, %cst_64 {dimension_numbers = #tpu.dot_dimension_numbers<[1], [0], [0], [1], [0, 0, 1, 1], [], []>} : vector<32x128xbf16>, vector<128x64xbf16>, vector<32x64xf32> -> vector<32x64xf32>
    %c0_65 = arith.constant 0 : index
    %c0_66 = arith.constant 0 : index
    %150 = vector.load %arg15[%c0_65, %c0_66] : memref<1x64xf32, #tpu.memory_space<vmem>>, vector<1x64xf32>
    %151 = vector.broadcast %150 : vector<1x64xf32> to vector<32x64xf32>
    %152 = arith.addf %149, %151 : vector<32x64xf32>
    %153 = arith.addf %152, %131 : vector<32x64xf32>
    %154 = vector.shape_cast %153 : vector<32x64xf32> to vector<2x16x64xf32>
    %c0_67 = arith.constant 0 : index
    %c0_68 = arith.constant 0 : index
    %c0_69 = arith.constant 0 : index
    %155 = vector.load %arg16[%c0_67, %c0_68, %c0_69] : memref<2x16x64xf32, #tpu.memory_space<vmem>>, vector<2x16x64xf32>
    tpu.vector_store %arg16[%c0_67, %c0_68, %c0_69], %154 {strides = array<i32>} : memref<2x16x64xf32, #tpu.memory_space<vmem>>, vector<2x16x64xf32>,
    return
  }
  func.func @transform_0(%arg0: i32) -> (i32, i32, i32) {
    %c0_i32 = arith.constant 0 : i32
    %c0_i32_0 = arith.constant 0 : i32
    %c0_i32_1 = arith.constant 0 : i32
    return %arg0, %c0_i32, %c0_i32_0 : i32, i32, i32
  }
  func.func @transform_1(%arg0: i32) -> (i32, i32) {
    %c0_i32 = arith.constant 0 : i32
    %c0_i32_0 = arith.constant 0 : i32
    %c0_i32_1 = arith.constant 0 : i32
    return %c0_i32, %c0_i32_0 : i32, i32
  }
  func.func @transform_2(%arg0: i32) -> (i32, i32) {
    %c0_i32 = arith.constant 0 : i32
    %c0_i32_0 = arith.constant 0 : i32
    %c0_i32_1 = arith.constant 0 : i32
    return %c0_i32, %c0_i32_0 : i32, i32
  }
  func.func @transform_3(%arg0: i32) -> (i32, i32) {
    %c0_i32 = arith.constant 0 : i32
    %c0_i32_0 = arith.constant 0 : i32
    %c0_i32_1 = arith.constant 0 : i32
    return %c0_i32, %c0_i32_0 : i32, i32
  }
  func.func @transform_4(%arg0: i32) -> (i32, i32) {
    %c0_i32 = arith.constant 0 : i32
    %c0_i32_0 = arith.constant 0 : i32
    %c0_i32_1 = arith.constant 0 : i32
    return %c0_i32, %c0_i32_0 : i32, i32
  }
  func.func @transform_5(%arg0: i32) -> (i32, i32) {
    %c0_i32 = arith.constant 0 : i32
    %c0_i32_0 = arith.constant 0 : i32
    %c0_i32_1 = arith.constant 0 : i32
    return %c0_i32, %c0_i32_0 : i32, i32
  }
  func.func @transform_6(%arg0: i32) -> (i32, i32) {
    %c0_i32 = arith.constant 0 : i32
    %c0_i32_0 = arith.constant 0 : i32
    %c0_i32_1 = arith.constant 0 : i32
    return %c0_i32, %c0_i32_0 : i32, i32
  }
  func.func @transform_7(%arg0: i32) -> (i32, i32) {
    %c0_i32 = arith.constant 0 : i32
    %c0_i32_0 = arith.constant 0 : i32
    %c0_i32_1 = arith.constant 0 : i32
    return %c0_i32, %c0_i32_0 : i32, i32
  }
  func.func @transform_8(%arg0: i32) -> (i32, i32, i32) {
    %c0_i32 = arith.constant 0 : i32
    %c0_i32_0 = arith.constant 0 : i32
    %c0_i32_1 = arith.constant 0 : i32
    %c0_i32_2 = arith.constant 0 : i32
    return %c0_i32, %c0_i32_0, %c0_i32_1 : i32, i32, i32
  }
  func.func @transform_9(%arg0: i32) -> (i32, i32) {
    %c0_i32 = arith.constant 0 : i32
    %c0_i32_0 = arith.constant 0 : i32
    %c0_i32_1 = arith.constant 0 : i32
    return %c0_i32, %c0_i32_0 : i32, i32
  }
  func.func @transform_10(%arg0: i32) -> (i32, i32) {
    %c0_i32 = arith.constant 0 : i32
    %c0_i32_0 = arith.constant 0 : i32
    %c0_i32_1 = arith.constant 0 : i32
    return %c0_i32, %c0_i32_0 : i32, i32
  }
  func.func @transform_11(%arg0: i32) -> (i32, i32) {
    %c0_i32 = arith.constant 0 : i32
    %c0_i32_0 = arith.constant 0 : i32
    %c0_i32_1 = arith.constant 0 : i32
    return %c0_i32, %c0_i32_0 : i32, i32
  }
  func.func @transform_12(%arg0: i32) -> (i32, i32) {
    %c0_i32 = arith.constant 0 : i32
    %c0_i32_0 = arith.constant 0 : i32
    %c0_i32_1 = arith.constant 0 : i32
    return %c0_i32, %c0_i32_0 : i32, i32
  }
  func.func @transform_13(%arg0: i32) -> (i32, i32) {
    %c0_i32 = arith.constant 0 : i32
    %c0_i32_0 = arith.constant 0 : i32
    %c0_i32_1 = arith.constant 0 : i32
    return %c0_i32, %c0_i32_0 : i32, i32
  }
  func.func @transform_14(%arg0: i32) -> (i32, i32) {
    %c0_i32 = arith.constant 0 : i32
    %c0_i32_0 = arith.constant 0 : i32
    %c0_i32_1 = arith.constant 0 : i32
    return %c0_i32, %c0_i32_0 : i32, i32
  }
  func.func @transform_15(%arg0: i32) -> (i32, i32, i32) {
    %c0_i32 = arith.constant 0 : i32
    %c0_i32_0 = arith.constant 0 : i32
    %c0_i32_1 = arith.constant 0 : i32
    return %arg0, %c0_i32, %c0_i32_0 : i32, i32, i32
  }
}

</mosaic_0001>

<bundles_post_ra>
// kernel: _lambda_.1
= control target key start
LH: loop header
LB: loop body
LE: loop exit
PB: predicated region body
PF: predicated region fallthrough
CT: control target
= control target key end

     0   :  { %vm206_vm0 = vcmask 261120   ;;  %s3551_s0 = inlined_call_operand.vmem [shape: bf16[2,64,32], index: 0, kind: input, shape index: {}]   ;;  %s3552_s1 = inlined_call_operand.vmem [shape: bf16[32,128], index: 1, kind: input, shape index: {}]   ;;  %s3553_s2 = inlined_call_operand.vmem [shape: bf16[32,32], index: 2, kind: input, shape index: {}]   ;;  %s3554_s3 = inlined_call_operand.vmem [shape: f32[1,32], index: 3, kind: input, shape index: {}]   ;;  %s3555_s4 = inlined_call_operand.vmem [shape: bf16[32,32], index: 4, kind: input, shape index: {}]   ;;  %s3556_s5 = inlined_call_operand.vmem [shape: f32[1,32], index: 5, kind: input, shape index: {}]   ;;  %s3557_s6 = inlined_call_operand.vmem [shape: bf16[32,128], index: 6, kind: input, shape index: {}]   ;;  %s3558_s7 = inlined_call_operand.vmem [shape: f32[1,128], index: 7, kind: input, shape index: {}]   ;;  %s3559_s8 = inlined_call_operand.vmem [shape: f32[4,16,64], index: 8, kind: input, shape index: {}]   ;;  %s3560_s9 = inlined_call_operand.vmem [shape: bf16[128,64], index: 9, kind: input, shape index: {}]   ;;  %s3561_s10 = inlined_call_operand.vmem [shape: f32[1,64], index: 10, kind: input, shape index: {}]   ;;  %s3562_s11 = inlined_call_operand.vmem [shape: bf16[64,128], index: 11, kind: input, shape index: {}]   ;;  %s3563_s12 = inlined_call_operand.vmem [shape: f32[1,128], index: 12, kind: input, shape index: {}]   ;;  %s3564_s13 = inlined_call_operand.vmem [shape: bf16[128,64], index: 13, kind: input, shape index: {}]   ;;  %s3565_s14 = inlined_call_operand.vmem [shape: f32[1,64], index: 14, kind: input, shape index: {}]   ;;  %s3566_s15 = inlined_call_operand.hbm [shape: f32[2,16,64], index: 15, kind: output, shape index: {}]  }
   0x1   :  { %v2919_v0 = vld [vmem:[%s3551_s0 + $0x38] sm:$0xff]   ;;  %v2924_v1 = vld [vmem:[%s3551_s0 + $0x30] sm:$0xff]   ;;  %v2932_v2 = vld [vmem:[%s3551_s0 + $0x28] sm:$0xff]  }
   0x2   :  { %2380 = vmatprep.subr.bf16.mxu0 %v2919_v0  ;;  %v2937_v3 = vld [vmem:[%s3551_s0 + $0x20] sm:$0xff]   ;;  %v2954_v6 = vld [vmem:[%s3551_s0 + $0x18] sm:$0xff]   ;;  %v2713_v7 = vld [vmem:[%s3555_s4 + $0x8] sm:$0xff]  }
   0x3   :  { %2381 = vmatpush3.bf16.msra.mxu0 %v2919_v0  ;;  %v2943_v4 = vld [vmem:[%s3551_s0] sm:$0xff]   ;;  %2408 = vmatprep.subr.bf16.mxu1 %v2713_v7  ;;  %v2967_v9 = vld [vmem:[%s3551_s0 + $0x10] sm:$0xff]   ;;  %v2974_v10 = vld [vmem:[%s3551_s0 + $0x8] sm:$0xff]  }
   0x4   :  { %2382 = vmatprep.subr.bf16.mxu0 %v2924_v1  ;;  %v2711_v5 = vld [vmem:[%s3552_s1] sm:$0xff]   ;;  %2412 = vmatprep.mubr.msk.bf16.mxu1 %vm206_vm0, %v2943_v4 }
   0x5   :  { %2396 = vmatprep.mubr.bf16.mxu0 %v2711_v5  ;;  %v2714_v8 = vld [vmem:[%s3555_s4] sm:$0xff]   ;;  %2409 = vmatpush3.bf16.msra.mxu1 %v2713_v7 }
   0x6   :  { %2410 = vmatprep.subr.bf16.mxu1 %v2714_v8 }
   0x7   :  { %2383 = vmatpush3.bf16.msra.mxu0 %v2924_v1 }
   0x8   :  { %2384 = vmatprep.subr.bf16.mxu0 %v2932_v2 }
   0x9   :  { %2411 = vmatpush3.bf16.msra.mxu1 %v2714_v8 }
   0xb   :  { %2385 = vmatpush3.bf16.msra.mxu0 %v2932_v2 }
   0xc   :  { %2386 = vmatprep.subr.bf16.mxu0 %v2937_v3  ;;  %2413 = vmatmul.mubr.msk.bf16.vlgmr.msra.gmra.mxu1 %vm206_vm0, %v2974_v10 }
   0xd   :  { %2416 = vmatprep.mubr.msk.bf16.mxu1 %vm206_vm0, %v2967_v9 }
   0xf   :  { %2387 = vmatpush3.bf16.msra.mxu0 %v2937_v3 }
  0x10   :  { %2388 = vmatprep.subr.bf16.mxu0 %v2954_v6 }
  0x13   :  { %2389 = vmatpush3.bf16.msra.mxu0 %v2954_v6 }
  0x14   :  { %2390 = vmatprep.subr.bf16.mxu0 %v2967_v9  ;;  %2417 = vmatmul.mubr.msk.bf16.gmra.mxu1 %vm206_vm0, %v2954_v6 }
  0x17   :  { %2391 = vmatpush3.bf16.msra.mxu0 %v2967_v9 }
  0x18   :  { %2392 = vmatprep.subr.bf16.mxu0 %v2974_v10 }
  0x1b   :  { %2393 = vmatpush3.bf16.msra.mxu0 %v2974_v10 }
  0x1c   :  { %2394 = vmatprep.subr.bf16.mxu0 %v2943_v4 }
  0x1d   :  { %20 = vsyncpa [#allocation3], 0  ;;  %2420 = vmatprep.mubr.msk.bf16.mxu1 %vm206_vm0, %v2937_v3  ;;  %v2712_v11 = vld [vmem:[%s3552_s1 + $0x8] sm:$0xff]   ;;  %v2716_v13 = vld [vmem:[%s3553_s2] sm:$0xff]   ;;  %v2825_v14 = vmov 0.0   ;;  %vm546_vm1 = vcmask 64512  }
  0x1e   :  { %2421 = vmatmul.mubr.msk.bf16.gmra.mxu1 %vm206_vm0, %v2932_v2  ;;  %v2715_v12 = vld [vmem:[%s3553_s2 + $0x8] sm:$0xff]   ;;  %2448 = vmatprep.subr.bf16.mxu1 %v2825_v14  ;;  %v3013_v20 = vld [vmem:[%s3556_s5] ss:$0 sm:$0xff]  ;;  %vm2826_vm2 = vmmov 0   ;;  %vm659_vm3 = vcmask 523264   ;;  %s2827_s22 = smov 120  }
  0x1f   :  { %2395 = vmatpush3.bf16.msra.mxu0 %v2943_v4  ;;  %2424 = vmatprep.mubr.msk.bf16.mxu1 %vm206_vm0, %v2924_v1  ;;  %v2717_v15 = vld [vmem:[%s3557_s6 + $0x8] sm:$0xff]   ;;  %v2718_v42 = vld [vmem:[%s3557_s6] sm:$0xff]   ;;  %s2828_s25 = smov 96   ;;  %s2829_s26 = smov 112   ;;  %vm1747_vm4 = vcmask 785408  }
  0x20   :  { %2400 = vmatprep.subr.bf16.mxu0 %v2715_v12  ;;  %s2830_s30 = smov 64   ;;  %s2831_s16 = smov 104  }
  0x22   :  { %2397 = vmatmul.mubr.bf16.vlgmr.msra.gmra.mxu0 %v2712_v11 }
  0x23   :  { %2401 = vmatpush3.bf16.msra.mxu0 %v2715_v12 }
  0x24   :  { %2402 = vmatprep.subr.bf16.mxu0 %v2716_v13 }
  0x26   :  { %2425 = vmatmul.mubr.msk.bf16.gmra.mxu1 %vm206_vm0, %v2919_v0 }
  0x27   :  { %2403 = vmatpush3.bf16.msra.mxu0 %v2716_v13  ;;  %2456 = vmatprep.mubr.msk.bf16.mxu1 %vm2826_vm2, %v2825_v14 }
  0x28   :  { %2428 = vmatprep.subr.bf16.mxu0 %v2717_v15 }
  0xcc   :  { %v2414_v16 = vpop.f32.mrf.mxu1 }
  0xcd   :  { %v352_v43 = vadd.f32 %v2414_v16, %v3013_v20 }
  0xce   :  { %v343_v17 = vpop.f32.mrf.mxu1 }
  0xcf   :  { %v344_v52 = vadd.f32 %v3013_v20, %v343_v17 }
  0xd0   :  { %v2415_v18 = vpop.f32.mrf.mxu1 }
  0xd1   :  { %v355_v44 = vadd.f32 %v2415_v18, %v3013_v20 }
  0xd2   :  { %v346_v19 = vpop.f32.mrf.mxu1 }
  0xd3   :  { %v3037_v48 = vpack.c.bf16 %v355_v44, %v352_v43  ;;  %v347_v53 = vadd.f32 %v3013_v20, %v346_v19 }
  0xd4   :  { %v2418_v21 = vpop.f32.mrf.mxu1 }
  0xd5   :  { %v368_v23 = vadd.f32 %v2418_v21, %v3013_v20  ;;  %v554_v57 = vsel %vm546_vm1, %v3037_v48, 0  ;;  %v3057_v60 = vpack.c.bf16 %v347_v53, %v344_v52 }
  0xd6   :  { %v359_v22 = vpop.f32.mrf.mxu1 }
  0xd7   :  { %v360_v28 = vadd.f32 %v3013_v20, %v359_v22 }
  0xd8   :  { %v2419_v24 = vpop.f32.mrf.mxu1 }
  0xd9   :  { %v371_v25 = vadd.f32 %v2419_v24, %v3013_v20  ;;  %v2182_v24 = vld [vmem:[%s3558_s7] ss:$0 sm:$0xff] }
  0xda   :  { %v362_v27 = vpop.f32.mrf.mxu1 }
  0xdb   :  { %v3018_v29 = vpack.c.bf16 %v371_v25, %v368_v23  ;;  %v363_v30 = vadd.f32 %v3013_v20, %v362_v27 }
  0xdd   :  { %v560_v33 = vsel %vm546_vm1, %v3018_v29, 0  ;;  %v3023_v36 = vpack.c.bf16 %v363_v30, %v360_v28 }
  0xde   :  { %v2422_v32 = vpop.f32.mrf.mxu1  ;;  %2449 = vmatpush3.bf16.xpose.msra.mxu1 %v560_v33 }
  0xdf   :  { %2450 = vmatprep.subr.bf16.mxu1 %v2825_v14  ;;  %v557_v45 = vsel %vm546_vm1, %v3023_v36, 0  ;;  %v384_v62 = vadd.f32 %v2422_v32, %v3013_v20 }
  0xe0   :  { %v375_v35 = vpop.f32.mrf.mxu1 }
  0xe1   :  { %v376_v8 = vadd.f32 %v3013_v20, %v375_v35 }
  0xe2   :  { %v2398_v26 = vpop.f32.mrf.mxu0  ;;  %v2423_v38 = vpop.f32.mrf.mxu1 }
  0xe3   :  { %v387_v63 = vadd.f32 %v2423_v38, %v3013_v20 }
  0xe4   :  { %v166_v31 = vpop.f32.mrf.mxu0  ;;  %v378_v41 = vpop.f32.mrf.mxu1 }
  0xe5   :  { %v3073_v7 = vpack.c.bf16 %v387_v63, %v384_v62 }
  0xe6   :  { %v2399_v34 = vpop.f32.mrf.mxu0  ;;  %v2426_v46 = vpop.f32.mrf.mxu1  ;;  %2451 = vmatpush3.bf16.xpose.msra.mxu1 %v557_v45 }
  0xe7   :  { %v182_v40 = vpack.c.bf16 %v2399_v34, %v2398_v26  ;;  %v400_v49 = vadd.f32 %v2426_v46, %v3013_v20  ;;  %2452 = vmatprep.subr.bf16.mxu1 %v2825_v14 }
  0xe8   :  { %v169_v37 = vpop.f32.mrf.mxu0  ;;  %v391_v47 = vpop.f32.mrf.mxu1 }
  0xe9   :  { %v181_v39 = vpack.c.bf16 %v169_v37, %v166_v31  ;;  %v392_v55 = vadd.f32 %v3013_v20, %v391_v47 }
  0xea   :  { %v2427_v50 = vpop.f32.mrf.mxu1 }
  0xeb   :  { %2404 = vmatprep.mubr.msk.bf16.mxu0 %vm206_vm0, %v181_v39  ;;  %v403_v51 = vadd.f32 %v2427_v50, %v3013_v20 }
  0xec   :  { %2405 = vmatmul.mubr.msk.bf16.vlgmr.msra.gmra.mxu0 %vm206_vm0, %v182_v40  ;;  %v394_v54 = vpop.f32.mrf.mxu1 }
  0xed   :  { %2429 = vmatpush3.bf16.msra.mxu0 %v2717_v15  ;;  %2432 = vmatprep.mubr.msk.bf16.mxu0 %vm206_vm0, %v2943_v4  ;;  %v3046_v56 = vpack.c.bf16 %v403_v51, %v400_v49  ;;  %v395_v58 = vadd.f32 %v3013_v20, %v394_v54  ;;  %v551_v4 = vsel %vm546_vm1, %v3057_v60, 0 }
  0xee   :  { %2430 = vmatprep.subr.bf16.mxu0 %v2718_v42  ;;  %2453 = vmatpush3.bf16.xpose.msra.mxu1 %v554_v57 }
  0xef   :  { %v616_v59 = vsel %vm546_vm1, %v3046_v56, 0  ;;  %v3059_v61 = vpack.c.bf16 %v395_v58, %v392_v55  ;;  %2454 = vmatprep.subr.bf16.mxu1 %v2825_v14 }
  0xf1   :  { %2431 = vmatpush3.bf16.msra.mxu0 %v2718_v42  ;;  %v613_v5 = vsel %vm546_vm1, %v3059_v61, 0 }
  0xf2   :  { %2460 = vmatprep.subr.bf16.mxu0 %v2825_v14 }
  0xf4   :  { %2433 = vmatmul.mubr.msk.bf16.vlgmr.msra.gmra.mxu0 %vm206_vm0, %v2974_v10  ;;  %v610_v10 = vsel %vm546_vm1, %v3073_v7, 0 }
  0xf5   :  { %2436 = vmatprep.mubr.msk.bf16.mxu0 %vm206_vm0, %v2967_v9  ;;  %2461 = vmatpush3.bf16.xpose.msra.mxu0 %v616_v59  ;;  %v379_v9 = vadd.f32 %v3013_v20, %v378_v41 }
  0xf6   :  { %2462 = vmatprep.subr.bf16.mxu0 %v2825_v14  ;;  %2455 = vmatpush3.bf16.xpose.msra.mxu1 %v551_v4 }
  0xf7   :  { %2472 = vmatprep.subr.bf16.mxu1 %v2825_v14 }
  0xfc   :  { %2437 = vmatmul.mubr.msk.bf16.gmra.mxu0 %vm206_vm0, %v2954_v6 }
  0xfd   :  { %2440 = vmatprep.mubr.msk.bf16.mxu0 %vm206_vm0, %v2937_v3  ;;  %2463 = vmatpush3.bf16.xpose.msra.mxu0 %v613_v5  ;;  %v3085_v3 = vpack.c.bf16 %v379_v9, %v376_v8  ;;  %v544_v9 = vld [vmem:[%s3559_s8] sm:$0xff] }
  0xfe   :  { %2464 = vmatprep.subr.bf16.mxu0 %v2825_v14 }
  0xff   :  { %v607_v6 = vsel %vm546_vm1, %v3085_v3, 0 }
 0x104   :  { %2441 = vmatmul.mubr.msk.bf16.gmra.mxu0 %vm206_vm0, %v2932_v2  ;;  %v2166_v2 = vld [vmem:[%s3554_s3] ss:$0 sm:$0xff] }
 0x105   :  { %2444 = vmatprep.mubr.msk.bf16.mxu0 %vm206_vm0, %v2924_v1  ;;  %2465 = vmatpush3.bf16.xpose.msra.mxu0 %v610_v10 }
 0x106   :  { %2466 = vmatprep.subr.bf16.mxu0 %v2825_v14 }
 0x10c   :  { %2445 = vmatmul.mubr.msk.bf16.gmra.mxu0 %vm206_vm0, %v2919_v0 }
 0x10d   :  { %2467 = vmatpush3.bf16.xpose.msra.mxu0 %v607_v6  ;;  %2468 = vmatprep.mubr.msk.bf16.mxu0 %vm2826_vm2, %v2825_v14 }
 0x10e   :  { %2496 = vmatprep.subr.bf16.mxu0 %v2825_v14 }
 0x1ac   :  { %v2406_v1 = vpop.f32.mrf.mxu0 }
 0x1ad   :  { %v256_v13 = vadd.f32 %v2406_v1, %v2166_v2 }
 0x1ae   :  { %v247_v11 = vpop.f32.mrf.mxu0 }
 0x1af   :  { %v248_v16 = vadd.f32 %v2166_v2, %v247_v11  ;;  %v545_v11 = vld [vmem:[%s3559_s8 + $0x8] sm:$0xff] }
 0x1b0   :  { %v2407_v12 = vpop.f32.mrf.mxu0 }
 0x1b1   :  { %v259_v15 = vadd.f32 %v2407_v12, %v2166_v2 }
 0x1b2   :  { %v250_v0 = vpop.f32.mrf.mxu0 }
 0x1b3   :  { %v3100_v17 = vpack.c.bf16 %v259_v15, %v256_v13  ;;  %v251_v18 = vadd.f32 %v2166_v2, %v250_v0 }
 0x1b4   :  { %v2434_v19 = vpop.f32.mrf.mxu0 }
 0x1b5   :  { %v3102_v20 = vpack.c.bf16 %v251_v18, %v248_v16  ;;  %2469 = vmatmul.mubr.msk.bf16.vlgmr.msra.gmra.mxu0 %vm546_vm1, %v3100_v17  ;;  %v472_v37 = vadd.f32 %v2434_v19, %v2182_v24 }
 0x1b6   :  { %v463_v21 = vpop.f32.mrf.mxu0  ;;  %2504 = vmatprep.mubr.msk.bf16.mxu0 %vm2826_vm2, %v2825_v14 }
 0x1b7   :  { %2457 = vmatmul.mubr.msk.bf16.vlgmr.msra.gmra.mxu1 %vm546_vm1, %v3102_v20  ;;  %v464_v44 = vadd.f32 %v2182_v24, %v463_v21 }
 0x1b8   :  { %v2435_v22 = vpop.f32.mrf.mxu0  ;;  %2480 = vmatprep.mubr.msk.bf16.mxu1 %vm2826_vm2, %v2825_v14 }
 0x1b9   :  { %v475_v38 = vadd.f32 %v2435_v22, %v2182_v24 }
 0x1ba   :  { %v466_v23 = vpop.f32.mrf.mxu0 }
 0x1bb   :  { %v3121_v45 = vpack.c.bf16 %v475_v38, %v472_v37  ;;  %v467_v46 = vadd.f32 %v2182_v24, %v466_v23 }
 0x1bc   :  { %v2438_v25 = vpop.f32.mrf.mxu0 }
 0x1bd   :  { %v488_v27 = vadd.f32 %v2438_v25, %v2182_v24  ;;  %v3127_v53 = vpack.c.bf16 %v467_v46, %v464_v44 }
 0x1be   :  { %v479_v26 = vpop.f32.mrf.mxu0 }
 0x1bf   :  { %v480_v30 = vadd.f32 %v2182_v24, %v479_v26 }
 0x1c0   :  { %v2439_v28 = vpop.f32.mrf.mxu0 }
 0x1c1   :  { %v491_v31 = vadd.f32 %v2439_v28, %v2182_v24 }
 0x1c2   :  { %v482_v32 = vpop.f32.mrf.mxu0 }
 0x1c3   :  { %v3115_v33 = vpack.c.bf16 %v491_v31, %v488_v27  ;;  %v483_v34 = vadd.f32 %v2182_v24, %v482_v32 }
 0x1c4   :  { %v2442_v35 = vpop.f32.mrf.mxu0 }
 0x1c5   :  { %v3117_v39 = vpack.c.bf16 %v483_v34, %v480_v30  ;;  %2473 = vmatpush3.bf16.msra.mxu1 %v3115_v33  ;;  %v504_v40 = vadd.f32 %v2442_v35, %v2182_v24 }
 0x1c6   :  { %2474 = vmatprep.subr.bf16.mxu1 %v2825_v14  ;;  %v495_v41 = vpop.f32.mrf.mxu0 }
 0x1c7   :  { %v496_v42 = vadd.f32 %v2182_v24, %v495_v41 }
 0x1c8   :  { %v2443_v43 = vpop.f32.mrf.mxu0 }
 0x1c9   :  { %2475 = vmatpush3.bf16.msra.mxu1 %v3117_v39  ;;  %v507_v47 = vadd.f32 %v2443_v43, %v2182_v24 }
 0x1ca   :  { %2476 = vmatprep.subr.bf16.mxu1 %v2825_v14  ;;  %v498_v49 = vpop.f32.mrf.mxu0 }
 0x1cb   :  { %v3125_v50 = vpack.c.bf16 %v507_v47, %v504_v40  ;;  %v499_v51 = vadd.f32 %v2182_v24, %v498_v49 }
 0x1cc   :  { %v2446_v52 = vpop.f32.mrf.mxu0 }
 0x1cd   :  { %2477 = vmatpush3.bf16.msra.mxu1 %v3121_v45  ;;  %v3130_v54 = vpack.c.bf16 %v499_v51, %v496_v42  ;;  %v520_v55 = vadd.f32 %v2446_v52, %v2182_v24 }
 0x1ce   :  { %2478 = vmatprep.subr.bf16.mxu1 %v2825_v14  ;;  %v511_v57 = vpop.f32.mrf.mxu0 }
 0x1cf   :  { %v512_v58 = vadd.f32 %v2182_v24, %v511_v57 }
 0x1d0   :  { %v2447_v59 = vpop.f32.mrf.mxu0 }
 0x1d1   :  { %2479 = vmatpush3.bf16.msra.mxu1 %v3127_v53  ;;  %v523_v62 = vadd.f32 %v2447_v59, %v2182_v24 }
 0x1d2   :  { %v514_v63 = vpop.f32.mrf.mxu0  ;;  %2484 = vmatprep.subr.bf16.mxu1 %v2825_v14 }
 0x1d3   :  { %v3135_v4 = vpack.c.bf16 %v523_v62, %v520_v55  ;;  %v515_v5 = vadd.f32 %v2182_v24, %v514_v63 }
 0x1d5   :  { %v3137_v8 = vpack.c.bf16 %v515_v5, %v512_v58 }
 0x275   :  { %v652_v10 = vpop.f32.mrf.mxu0 }
 0x276   :  { %v653_v6 = vadd.f32 %v652_v10, %v544_v9 }
 0x277   :  { %v596_v1 = vpop.f32.mrf.mxu1  ;;  %v2470_v2 = vpop.f32.mrf.mxu0 }
 0x278   :  { %v597_v12 = vadd.f32 %v596_v1, %v544_v9  ;;  %v666_v13 = vsel %vm659_vm3, %v653_v6, -inf }
 0x279   :  { %667 = vmax.xlane.f32.xlu1 %v666_v13  ;;  %v2458_v15 = vpop.f32.mrf.mxu1  ;;  %v655_v0 = vpop.f32.mrf.mxu0 }
 0x27a   :  { %v656_v16 = vadd.f32 %v655_v0, %v545_v11  ;;  %v660_v18 = vsel %vm659_vm3, %v597_v12, -inf }
 0x27b   :  { %v2471_v19 = vpop.f32.mrf.mxu0  ;;  %661 = vmax.xlane.f32.xlu0 %v660_v18  ;;  %v599_v21 = vpop.f32.mrf.mxu1 }
 0x27c   :  { %v600_v22 = vadd.f32 %v599_v21, %v545_v11  ;;  %v669_v23 = vsel %vm659_vm3, %v656_v16, -inf }
 0x27d   :  { %670 = vmax.xlane.f32.xlu1 %v669_v23  ;;  %v2459_v24 = vpop.f32.mrf.mxu1 }
 0x27e   :  { %v663_v25 = vsel %vm659_vm3, %v600_v22, -inf }
 0x27f   :  { %664 = vmax.xlane.f32.xlu0 %v663_v25 }
 0x302   :  { %v668_v26 = vpop.xlane.xlu1 %667 }
 0x303   :  { %v674_v27 = vsub.f32 %v653_v6, %v668_v26 }
 0x304   :  { %v662_v28 = vpop.xlane.xlu0 %661 }
 0x305   :  { %v672_v30 = vsub.f32 %v597_v12, %v662_v28  ;;  %v680_v32 = vmul.f32 1.442695, %v674_v27 }
 0x306   :  { %v671_v31 = vpop.xlane.xlu1 %670 }
 0x307   :  { %v676_v34 = vmul.f32 1.442695, %v672_v30  ;;  %v675_v35 = vsub.f32 %v656_v16, %v671_v31 }
 0x308   :  { %v665_v37 = vpop.xlane.xlu0 %664 }
 0x309   :  { %2739 = vpow2.f32 %v676_v34  ;;  %v673_v38 = vsub.f32 %v600_v22, %v665_v37  ;;  %v682_v40 = vmul.f32 1.442695, %v675_v35 }
 0x30a   :  { %2741 = vpow2.f32 %v680_v32 }
 0x30b   :  { %v678_v41 = vmul.f32 1.442695, %v673_v38 }
 0x30d   :  { %2743 = vpow2.f32 %v678_v41 }
 0x30e   :  { %2745 = vpow2.f32 %v682_v40 }
 0x316   :  { %v2740_v42 = vpop.eup %2739 }
 0x317   :  { %v684_v43 = vsel %vm659_vm3, %v2740_v42, 0.0  ;;  %v2742_v44 = vpop.eup %2741 }
 0x318   :  { %685 = vadd.xlane.f32.xlu0 %v684_v43  ;;  %v690_v47 = vsel %vm659_vm3, %v2742_v44, 0.0 }
 0x31a   :  { %v2744_v46 = vpop.eup %2743 }
 0x31b   :  { %v687_v49 = vsel %vm659_vm3, %v2744_v46, 0.0  ;;  %v2746_v51 = vpop.eup %2745 }
 0x31c   :  { %691 = vadd.xlane.f32.xlu0 %v690_v47  ;;  %688 = vadd.xlane.f32.xlu1 %v687_v49  ;;  %v693_v52 = vsel %vm659_vm3, %v2746_v51, 0.0 }
 0x320   :  { %694 = vadd.xlane.f32.xlu1 %v693_v52 }
 0x331   :  { %881 = vrot.lane.b32.xlu1 %v3046_v56, %s2827_s22 }
 0x332   :  { %810 = vrot.lane.b32.xlu0 %v3018_v29, %s2827_s22 }
 0x335   :  { %808 = vrot.lane.b32.xlu1 %v3023_v36, %s2827_s22 }
 0x336   :  { %806 = vrot.lane.b32.xlu0 %v3037_v48, %s2827_s22 }
 0x339   :  { %879 = vrot.lane.b32.xlu1 %v3059_v61, %s2827_s22 }
 0x33a   :  { %804 = vrot.lane.b32.xlu0 %v3057_v60, %s2827_s22 }
 0x33d   :  { %877 = vrot.lane.b32.xlu1 %v3073_v7, %s2827_s22 }
 0x33e   :  { %798 = vrot.lane.b32.xlu0 %v3102_v20, %s2827_s22 }
 0x341   :  { %875 = vrot.lane.b32.xlu1 %v3085_v3, %s2827_s22 }
 0x345   :  { %869 = vrot.lane.b32.xlu1 %v3100_v17, %s2827_s22 }
 0x3a1   :  { %v686_v55 = vpop.xlane.xlu0 %685 }
 0x3a2   :  { %2747 = vrcp.f32 %v686_v55 }
 0x3a5   :  { %v689_v57 = vpop.xlane.xlu1 %688  ;;  %v692_v58 = vpop.xlane.xlu0 %691 }
 0x3a6   :  { %2749 = vrcp.f32 %v689_v57 }
 0x3a9   :  { %v695_v59 = vpop.xlane.xlu1 %694  ;;  %v811_v62 = vpop.permute.xlu0 %810 }
 0x3aa   :  { %v825_v63 = vsel %vm546_vm1, %v811_v62, 0  ;;  %2751 = vrcp.f32 %v695_v59 }
 0x3ab   :  { %2497 = vmatpush3.bf16.xpose.msra.mxu0 %v825_v63  ;;  %2753 = vrcp.f32 %v692_v58 }
 0x3ac   :  { %2498 = vmatprep.subr.bf16.mxu0 %v2825_v14 }
 0x3ad   :  { %v882_v5 = vpop.permute.xlu1 %881  ;;  %v807_v13 = vpop.permute.xlu0 %806 }
 0x3ae   :  { %v819_v15 = vsel %vm546_vm1, %v807_v13, 0  ;;  %v896_v24 = vsel %vm546_vm1, %v882_v5, 0 }
 0x3af   :  { %v2748_v9 = vpop.eup %2747 }
 0x3b0   :  { %v697_v2 = vmul.f32 %v2748_v9, %v2740_v42  ;;  %v2197_v42 = vld [vmem:[%s3559_s8 + $0x10] sm:$0xff] }
 0x3b1   :  { %v809_v10 = vpop.permute.xlu1 %808  ;;  %v805_v16 = vpop.permute.xlu0 %804 }
 0x3b2   :  { %v822_v6 = vsel %vm546_vm1, %v809_v10, 0  ;;  %v816_v19 = vsel %vm546_vm1, %v805_v16, 0 }
 0x3b3   :  { %v2750_v1 = vpop.eup %2749  ;;  %2499 = vmatpush3.bf16.xpose.msra.mxu0 %v822_v6 }
 0x3b4   :  { %v699_v11 = vmul.f32 %v2750_v1, %v2744_v46  ;;  %2500 = vmatprep.subr.bf16.mxu0 %v2825_v14 }
 0x3b5   :  { %v799_v25 = vpop.permute.xlu0 %798  ;;  %v880_v26 = vpop.permute.xlu1 %879 }
 0x3b6   :  { %v704_v12 = vpack.c.bf16 %v699_v11, %v697_v2  ;;  %v893_v27 = vsel %vm546_vm1, %v880_v26, 0 }
 0x3b7   :  { %v2752_v0 = vpop.eup %2751 }
 0x3b8   :  { %2481 = vmatmul.mubr.msk.bf16.vlgmr.msra.gmra.mxu1 %vm659_vm3, %v704_v12  ;;  %v2754_v18 = vpop.eup %2753  ;;  %v703_v21 = vmul.f32 %v2752_v0, %v2746_v51  ;;  %v2198_v51 = vld [vmem:[%s3559_s8 + $0x18] sm:$0xff] }
 0x3b9   :  { %2485 = vmatpush3.bf16.msra.mxu1 %v3135_v4  ;;  %2492 = vmatprep.mubr.msk.bf16.mxu1 %vm2826_vm2, %v2825_v14  ;;  %v701_v22 = vmul.f32 %v2754_v18, %v2742_v44  ;;  %v878_v28 = vpop.permute.xlu1 %877 }
 0x3ba   :  { %2486 = vmatprep.subr.bf16.mxu1 %v2825_v14  ;;  %v890_v30 = vsel %vm546_vm1, %v878_v28, 0 }
 0x3bb   :  { %2501 = vmatpush3.bf16.xpose.msra.mxu0 %v819_v15  ;;  %v705_v23 = vpack.c.bf16 %v703_v21, %v701_v22 }
 0x3bc   :  { %2502 = vmatprep.subr.bf16.mxu0 %v2825_v14 }
 0x3bd   :  { %2487 = vmatpush3.bf16.msra.mxu1 %v3137_v8  ;;  %v876_v31 = vpop.permute.xlu1 %875 }
 0x3be   :  { %2488 = vmatprep.subr.bf16.mxu1 %v2825_v14  ;;  %v887_v32 = vsel %vm546_vm1, %v876_v31, 0 }
 0x3c1   :  { %2489 = vmatpush3.bf16.msra.mxu1 %v3125_v50  ;;  %v870_v34 = vpop.permute.xlu1 %869 }
 0x3c2   :  { %2490 = vmatprep.subr.bf16.mxu1 %v2825_v14 }
 0x3c3   :  { %2503 = vmatpush3.bf16.xpose.msra.mxu0 %v816_v19 }
 0x3c4   :  { %2520 = vmatprep.subr.bf16.mxu0 %v2825_v14 }
 0x3c5   :  { %2491 = vmatpush3.bf16.msra.mxu1 %v3130_v54 }
 0x3c6   :  { %2508 = vmatprep.subr.bf16.mxu1 %v2825_v14 }
 0x3c8   :  { %2493 = vmatmul.mubr.msk.bf16.vlgmr.msra.gmra.mxu1 %vm659_vm3, %v705_v23 }
 0x3c9   :  { %2509 = vmatpush3.bf16.xpose.msra.mxu1 %v896_v24  ;;  %2516 = vmatprep.mubr.msk.bf16.mxu1 %vm2826_vm2, %v2825_v14 }
 0x3ca   :  { %2505 = vmatmul.mubr.msk.bf16.vlgmr.msra.gmra.mxu0 %vm546_vm1, %v799_v25  ;;  %2510 = vmatprep.subr.bf16.mxu1 %v2825_v14 }
 0x3cb   :  { %2528 = vmatprep.mubr.msk.bf16.mxu0 %vm2826_vm2, %v2825_v14 }
 0x3d1   :  { %2511 = vmatpush3.bf16.xpose.msra.mxu1 %v893_v27 }
 0x3d2   :  { %2512 = vmatprep.subr.bf16.mxu1 %v2825_v14 }
 0x3d9   :  { %2513 = vmatpush3.bf16.xpose.msra.mxu1 %v890_v30 }
 0x3da   :  { %2514 = vmatprep.subr.bf16.mxu1 %v2825_v14 }
 0x3e1   :  { %2515 = vmatpush3.bf16.xpose.msra.mxu1 %v887_v32 }
 0x3e2   :  { %2532 = vmatprep.subr.bf16.mxu1 %v2825_v14 }
 0x3e8   :  { %2517 = vmatmul.mubr.msk.bf16.vlgmr.msra.gmra.mxu1 %vm546_vm1, %v870_v34 }
 0x3e9   :  { %2540 = vmatprep.mubr.msk.bf16.mxu1 %vm2826_vm2, %v2825_v14 }
 0x478   :  { %v3199_v35 = vpop.f32.mrf.mxu1 }
 0x47a   :  { %v2482_v37 = vpop.f32.mrf.mxu1 }
 0x47c   :  { %v3201_v38 = vpop.f32.mrf.mxu1 }
 0x47e   :  { %v2483_v40 = vpop.f32.mrf.mxu1 }
 0x488   :  { %v3203_v41 = vpop.f32.mrf.mxu1 }
 0x48a   :  { %v2494_v43 = vpop.f32.mrf.mxu1  ;;  %v861_v44 = vpop.f32.mrf.mxu0 }
 0x48b   :  { %v862_v46 = vadd.f32 %v2197_v42, %v861_v44 }
 0x48c   :  { %v3208_v47 = vpop.f32.mrf.mxu1  ;;  %v2506_v49 = vpop.f32.mrf.mxu0 }
 0x48d   :  { %v939_v52 = vsel %vm659_vm3, %v862_v46, -inf }
 0x48e   :  { %v2495_v55 = vpop.f32.mrf.mxu1  ;;  %940 = vmax.xlane.f32.xlu0 %v939_v52  ;;  %v864_v57 = vpop.f32.mrf.mxu0 }
 0x48f   :  { %v865_v58 = vadd.f32 %v2198_v51, %v864_v57 }
 0x490   :  { %v2507_v59 = vpop.f32.mrf.mxu0 }
 0x491   :  { %v942_v62 = vsel %vm659_vm3, %v865_v58, -inf }
 0x492   :  { %943 = vmax.xlane.f32.xlu1 %v942_v62 }
 0x4a8   :  { %v932_v63 = vpop.f32.mrf.mxu1 }
 0x4a9   :  { %v933_v5 = vadd.f32 %v2197_v42, %v932_v63 }
 0x4aa   :  { %v2518_v9 = vpop.f32.mrf.mxu1 }
 0x4ab   :  { %v945_v10 = vsel %vm659_vm3, %v933_v5, -inf }
 0x4ac   :  { %946 = vmax.xlane.f32.xlu0 %v945_v10  ;;  %v935_v6 = vpop.f32.mrf.mxu1 }
 0x4ad   :  { %v936_v1 = vadd.f32 %v2198_v51, %v935_v6 }
 0x4ae   :  { %v2519_v2 = vpop.f32.mrf.mxu1 }
 0x4af   :  { %v948_v11 = vsel %vm659_vm3, %v936_v1, -inf }
 0x4b0   :  { %949 = vmax.xlane.f32.xlu0 %v948_v11 }
 0x517   :  { %v941_v12 = vpop.xlane.xlu0 %940 }
 0x518   :  { %v951_v13 = vsub.f32 %v862_v46, %v941_v12 }
 0x51a   :  { %v955_v15 = vmul.f32 1.442695, %v951_v13 }
 0x51b   :  { %v944_v0 = vpop.xlane.xlu1 %943 }
 0x51c   :  { %2755 = vpow2.f32 %v955_v15  ;;  %v952_v16 = vsub.f32 %v865_v58, %v944_v0 }
 0x51e   :  { %v957_v18 = vmul.f32 1.442695, %v952_v16 }
 0x520   :  { %2757 = vpow2.f32 %v957_v18 }
 0x529   :  { %v2756_v19 = vpop.eup %2755 }
 0x52a   :  { %v963_v21 = vsel %vm659_vm3, %v2756_v19, 0.0 }
 0x52b   :  { %964 = vadd.xlane.f32.xlu0 %v963_v21 }
 0x52d   :  { %v2758_v22 = vpop.eup %2757 }
 0x52e   :  { %v966_v23 = vsel %vm659_vm3, %v2758_v22, 0.0 }
 0x52f   :  { %967 = vadd.xlane.f32.xlu1 %v966_v23 }
 0x535   :  { %v947_v24 = vpop.xlane.xlu0 %946 }
 0x536   :  { %v953_v25 = vsub.f32 %v933_v5, %v947_v24 }
 0x538   :  { %v959_v26 = vmul.f32 1.442695, %v953_v25 }
 0x539   :  { %v950_v27 = vpop.xlane.xlu0 %949 }
 0x53a   :  { %2759 = vpow2.f32 %v959_v26  ;;  %v954_v28 = vsub.f32 %v936_v1, %v950_v27 }
 0x53c   :  { %v961_v30 = vmul.f32 1.442695, %v954_v28 }
 0x53e   :  { %2761 = vpow2.f32 %v961_v30 }
 0x540   :  { %1055 = vrot.lane.b32.xlu1 %v3135_v4, %s2828_s25 }
 0x541   :  { %995 = vrot.lane.b32.xlu0 %v3115_v33, %s2828_s25 }
 0x544   :  { %993 = vrot.lane.b32.xlu1 %v3117_v39, %s2828_s25 }
 0x545   :  { %991 = vrot.lane.b32.xlu0 %v3121_v45, %s2828_s25 }
 0x547   :  { %v3235_v31 = vpop.eup %2759 }
 0x548   :  { %1053 = vrot.lane.b32.xlu1 %v3137_v8, %s2828_s25  ;;  %v969_v32 = vsel %vm659_vm3, %v3235_v31, 0.0 }
 0x549   :  { %989 = vrot.lane.b32.xlu0 %v3127_v53, %s2828_s25 }
 0x54b   :  { %v3239_v34 = vpop.eup %2761 }
 0x54c   :  { %1051 = vrot.lane.b32.xlu1 %v3125_v50, %s2828_s25  ;;  %v972_v37 = vsel %vm659_vm3, %v3239_v34, 0.0 }
 0x550   :  { %1049 = vrot.lane.b32.xlu1 %v3130_v54, %s2828_s25 }
 0x568   :  { %970 = vadd.xlane.f32.xlu0 %v969_v32 }
 0x574   :  { %973 = vadd.xlane.f32.xlu1 %v972_v37 }
 0x57e   :  { %1116 = vrot.lane.b32.xlu0 %v3018_v29, %s2829_s26 }
 0x582   :  { %1114 = vrot.lane.b32.xlu0 %v3023_v36, %s2829_s26 }
 0x585   :  { %1182 = vrot.lane.b32.xlu1 %v3046_v56, %s2829_s26 }
 0x586   :  { %1112 = vrot.lane.b32.xlu0 %v3037_v48, %s2829_s26 }
 0x589   :  { %1180 = vrot.lane.b32.xlu1 %v3059_v61, %s2829_s26 }
 0x58a   :  { %1110 = vrot.lane.b32.xlu0 %v3057_v60, %s2829_s26 }
 0x58d   :  { %1178 = vrot.lane.b32.xlu1 %v3073_v7, %s2829_s26 }
 0x58e   :  { %1108 = vrot.lane.b32.xlu0 %v3102_v20, %s2829_s26 }
 0x591   :  { %1176 = vrot.lane.b32.xlu1 %v3085_v3, %s2829_s26 }
 0x595   :  { %1174 = vrot.lane.b32.xlu1 %v3100_v17, %s2829_s26 }
 0x5b4   :  { %v965_v40 = vpop.xlane.xlu0 %964 }
 0x5b5   :  { %2763 = vrcp.f32 %v965_v40 }
 0x5b8   :  { %v968_v42 = vpop.xlane.xlu1 %967  ;;  %v996_v43 = vpop.permute.xlu0 %995 }
 0x5b9   :  { %2765 = vrcp.f32 %v968_v42  ;;  %2521 = vmatpush3.bf16.msra.mxu0 %v996_v43 }
 0x5ba   :  { %2522 = vmatprep.subr.bf16.mxu0 %v2825_v14 }
 0x5bc   :  { %v1056_v44 = vpop.permute.xlu1 %1055  ;;  %v992_v49 = vpop.permute.xlu0 %991 }
 0x5bd   :  { %2533 = vmatpush3.bf16.msra.mxu1 %v1056_v44 }
 0x5be   :  { %2534 = vmatprep.subr.bf16.mxu1 %v2825_v14 }
 0x5c0   :  { %v994_v46 = vpop.permute.xlu1 %993  ;;  %v990_v59 = vpop.permute.xlu0 %989 }
 0x5c1   :  { %2523 = vmatpush3.bf16.msra.mxu0 %v994_v46 }
 0x5c2   :  { %2524 = vmatprep.subr.bf16.mxu0 %v2825_v14  ;;  %v2764_v51 = vpop.eup %2763 }
 0x5c3   :  { %v976_v57 = vmul.f32 %v2764_v51, %v2756_v19  ;;  %v2203_v51 = vld [vmem:[%s3559_s8 + $0x20] sm:$0xff] }
 0x5c4   :  { %v1054_v52 = vpop.permute.xlu1 %1053 }
 0x5c5   :  { %2525 = vmatpush3.bf16.msra.mxu0 %v992_v49  ;;  %2535 = vmatpush3.bf16.msra.mxu1 %v1054_v52 }
 0x5c6   :  { %v2766_v55 = vpop.eup %2765  ;;  %2536 = vmatprep.subr.bf16.mxu1 %v2825_v14  ;;  %2526 = vmatprep.subr.bf16.mxu0 %v2825_v14 }
 0x5c7   :  { %v978_v58 = vmul.f32 %v2766_v55, %v2758_v22 }
 0x5c8   :  { %v1052_v62 = vpop.permute.xlu1 %1051 }
 0x5c9   :  { %2527 = vmatpush3.bf16.msra.mxu0 %v990_v59  ;;  %2537 = vmatpush3.bf16.msra.mxu1 %v1052_v62  ;;  %v983_v63 = vpack.c.bf16 %v978_v58, %v976_v57  ;;  %v2204_v59 = vld [vmem:[%s3559_s8 + $0x28] sm:$0xff] }
 0x5ca   :  { %2538 = vmatprep.subr.bf16.mxu1 %v2825_v14  ;;  %2544 = vmatprep.subr.bf16.mxu0 %v2825_v14 }
 0x5cc   :  { %v1050_v5 = vpop.permute.xlu1 %1049  ;;  %2529 = vmatmul.mubr.msk.bf16.vlgmr.msra.gmra.mxu0 %vm659_vm3, %v983_v63 }
 0x5cd   :  { %2539 = vmatpush3.bf16.msra.mxu1 %v1050_v5  ;;  %2552 = vmatprep.mubr.msk.bf16.mxu0 %vm2826_vm2, %v2825_v14 }
 0x5ce   :  { %2556 = vmatprep.subr.bf16.mxu1 %v2825_v14 }
 0x5f1   :  { %v971_v9 = vpop.xlane.xlu0 %970 }
 0x5f2   :  { %2767 = vrcp.f32 %v971_v9 }
 0x5f5   :  { %v1117_v10 = vpop.permute.xlu0 %1116 }
 0x5f6   :  { %v1131_v6 = vsel %vm546_vm1, %v1117_v10, 0 }
 0x5f7   :  { %2545 = vmatpush3.bf16.xpose.msra.mxu0 %v1131_v6 }
 0x5f8   :  { %2546 = vmatprep.subr.bf16.mxu0 %v2825_v14 }
 0x5f9   :  { %v1115_v1 = vpop.permute.xlu0 %1114 }
 0x5fa   :  { %v1128_v11 = vsel %vm546_vm1, %v1115_v1, 0 }
 0x5fd   :  { %v974_v2 = vpop.xlane.xlu1 %973  ;;  %v1113_v12 = vpop.permute.xlu0 %1112 }
 0x5fe   :  { %2769 = vrcp.f32 %v974_v2  ;;  %v1125_v13 = vsel %vm546_vm1, %v1113_v12, 0 }
 0x5ff   :  { %2547 = vmatpush3.bf16.xpose.msra.mxu0 %v1128_v11  ;;  %v2768_v15 = vpop.eup %2767 }
 0x600   :  { %2548 = vmatprep.subr.bf16.mxu0 %v2825_v14  ;;  %v980_v18 = vmul.f32 %v2768_v15, %v3235_v31 }
 0x601   :  { %v1111_v16 = vpop.permute.xlu0 %1110  ;;  %v1183_v21 = vpop.permute.xlu1 %1182 }
 0x602   :  { %v1122_v22 = vsel %vm546_vm1, %v1111_v16, 0  ;;  %v1197_v24 = vsel %vm546_vm1, %v1183_v21, 0 }
 0x605   :  { %v1181_v25 = vpop.permute.xlu1 %1180  ;;  %v1109_v26 = vpop.permute.xlu0 %1108 }
 0x606   :  { %v1194_v27 = vsel %vm546_vm1, %v1181_v25, 0 }
 0x607   :  { %2549 = vmatpush3.bf16.xpose.msra.mxu0 %v1125_v13 }
 0x608   :  { %2550 = vmatprep.subr.bf16.mxu0 %v2825_v14 }
 0x609   :  { %v1179_v28 = vpop.permute.xlu1 %1178 }
 0x60a   :  { %v1191_v30 = vsel %vm546_vm1, %v1179_v28, 0 }
 0x60b   :  { %v2770_v0 = vpop.eup %2769 }
 0x60c   :  { %v982_v19 = vmul.f32 %v2770_v0, %v3239_v34 }
 0x60d   :  { %v1177_v31 = vpop.permute.xlu1 %1176 }
 0x60e   :  { %v984_v23 = vpack.c.bf16 %v982_v19, %v980_v18  ;;  %v1188_v32 = vsel %vm546_vm1, %v1177_v31, 0 }
 0x60f   :  { %2551 = vmatpush3.bf16.xpose.msra.mxu0 %v1122_v22 }
 0x610   :  { %2541 = vmatmul.mubr.msk.bf16.vlgmr.msra.gmra.mxu1 %vm659_vm3, %v984_v23  ;;  %2568 = vmatprep.subr.bf16.mxu0 %v2825_v14 }
 0x611   :  { %2557 = vmatpush3.bf16.xpose.msra.mxu1 %v1197_v24  ;;  %2564 = vmatprep.mubr.msk.bf16.mxu1 %vm2826_vm2, %v2825_v14  ;;  %v1175_v34 = vpop.permute.xlu1 %1174 }
 0x612   :  { %2558 = vmatprep.subr.bf16.mxu1 %v2825_v14 }
 0x616   :  { %2553 = vmatmul.mubr.msk.bf16.vlgmr.msra.gmra.mxu0 %vm546_vm1, %v1109_v26 }
 0x617   :  { %2576 = vmatprep.mubr.msk.bf16.mxu0 %vm2826_vm2, %v2825_v14 }
 0x619   :  { %2559 = vmatpush3.bf16.xpose.msra.mxu1 %v1194_v27 }
 0x61a   :  { %2560 = vmatprep.subr.bf16.mxu1 %v2825_v14 }
 0x621   :  { %2561 = vmatpush3.bf16.xpose.msra.mxu1 %v1191_v30 }
 0x622   :  { %2562 = vmatprep.subr.bf16.mxu1 %v2825_v14 }
 0x629   :  { %2563 = vmatpush3.bf16.xpose.msra.mxu1 %v1188_v32 }
 0x62a   :  { %2580 = vmatprep.subr.bf16.mxu1 %v2825_v14 }
 0x630   :  { %2565 = vmatmul.mubr.msk.bf16.vlgmr.msra.gmra.mxu1 %vm546_vm1, %v1175_v34 }
 0x631   :  { %2588 = vmatprep.mubr.msk.bf16.mxu1 %vm2826_vm2, %v2825_v14 }
 0x68c   :  { %v3291_v37 = vpop.f32.mrf.mxu0 }
 0x68e   :  { %v2530_v40 = vpop.f32.mrf.mxu0 }
 0x690   :  { %v3293_v42 = vpop.f32.mrf.mxu0 }
 0x692   :  { %v2531_v43 = vpop.f32.mrf.mxu0 }
 0x6d0   :  { %v3295_v44 = vpop.f32.mrf.mxu1 }
 0x6d2   :  { %v2542_v46 = vpop.f32.mrf.mxu1 }
 0x6d4   :  { %v3297_v49 = vpop.f32.mrf.mxu1 }
 0x6d6   :  { %v2543_v52 = vpop.f32.mrf.mxu1  ;;  %v1167_v55 = vpop.f32.mrf.mxu0 }
 0x6d7   :  { %v1168_v57 = vadd.f32 %v2203_v51, %v1167_v55 }
 0x6d8   :  { %v2554_v58 = vpop.f32.mrf.mxu0 }
 0x6d9   :  { %v1240_v62 = vsel %vm659_vm3, %v1168_v57, -inf }
 0x6da   :  { %1241 = vmax.xlane.f32.xlu0 %v1240_v62  ;;  %v1170_v63 = vpop.f32.mrf.mxu0 }
 0x6db   :  { %v1171_v5 = vadd.f32 %v2204_v59, %v1170_v63 }
 0x6dc   :  { %v2555_v9 = vpop.f32.mrf.mxu0 }
 0x6dd   :  { %v1243_v10 = vsel %vm659_vm3, %v1171_v5, -inf }
 0x6de   :  { %1244 = vmax.xlane.f32.xlu1 %v1243_v10 }
 0x6f0   :  { %v1233_v6 = vpop.f32.mrf.mxu1 }
 0x6f1   :  { %v1234_v1 = vadd.f32 %v2203_v51, %v1233_v6 }
 0x6f2   :  { %v2566_v2 = vpop.f32.mrf.mxu1 }
 0x6f3   :  { %v1246_v11 = vsel %vm659_vm3, %v1234_v1, -inf }
 0x6f4   :  { %1247 = vmax.xlane.f32.xlu0 %v1246_v11  ;;  %v1236_v12 = vpop.f32.mrf.mxu1 }
 0x6f5   :  { %v1237_v13 = vadd.f32 %v2204_v59, %v1236_v12 }
 0x6f6   :  { %v2567_v15 = vpop.f32.mrf.mxu1 }
 0x6f7   :  { %v1249_v0 = vsel %vm659_vm3, %v1237_v13, -inf }
 0x6f8   :  { %1250 = vmax.xlane.f32.xlu0 %v1249_v0 }
 0x763   :  { %v1242_v16 = vpop.xlane.xlu0 %1241 }
 0x764   :  { %v1252_v18 = vsub.f32 %v1168_v57, %v1242_v16 }
 0x766   :  { %v1256_v19 = vmul.f32 1.442695, %v1252_v18 }
 0x767   :  { %v1245_v21 = vpop.xlane.xlu1 %1244 }
 0x768   :  { %2771 = vpow2.f32 %v1256_v19  ;;  %v1253_v22 = vsub.f32 %v1171_v5, %v1245_v21 }
 0x76a   :  { %v1258_v23 = vmul.f32 1.442695, %v1253_v22 }
 0x76c   :  { %2773 = vpow2.f32 %v1258_v23 }
 0x775   :  { %v2772_v24 = vpop.eup %2771 }
 0x776   :  { %v1264_v25 = vsel %vm659_vm3, %v2772_v24, 0.0 }
 0x777   :  { %1265 = vadd.xlane.f32.xlu0 %v1264_v25 }
 0x779   :  { %v2774_v26 = vpop.eup %2773 }
 0x77a   :  { %v1267_v27 = vsel %vm659_vm3, %v2774_v26, 0.0 }
 0x77b   :  { %1268 = vadd.xlane.f32.xlu1 %v1267_v27 }
 0x77d   :  { %v1248_v28 = vpop.xlane.xlu0 %1247 }
 0x77e   :  { %v1254_v30 = vsub.f32 %v1234_v1, %v1248_v28 }
 0x780   :  { %v1260_v31 = vmul.f32 1.442695, %v1254_v30 }
 0x781   :  { %v1251_v32 = vpop.xlane.xlu0 %1250 }
 0x782   :  { %2775 = vpow2.f32 %v1260_v31  ;;  %v1255_v34 = vsub.f32 %v1237_v13, %v1251_v32 }
 0x784   :  { %v1262_v40 = vmul.f32 1.442695, %v1255_v34 }
 0x786   :  { %2777 = vpow2.f32 %v1262_v40 }
 0x78c   :  { %1348 = vrot.lane.b32.xlu1 %v3135_v4, %s2830_s30 }
 0x78d   :  { %1292 = vrot.lane.b32.xlu0 %v3115_v33, %s2830_s30 }
 0x78f   :  { %v3327_v43 = vpop.eup %2775 }
 0x790   :  { %1290 = vrot.lane.b32.xlu1 %v3117_v39, %s2830_s30  ;;  %v1270_v46 = vsel %vm659_vm3, %v3327_v43, 0.0 }
 0x791   :  { %1288 = vrot.lane.b32.xlu0 %v3121_v45, %s2830_s30 }
 0x793   :  { %v3331_v51 = vpop.eup %2777 }
 0x794   :  { %1346 = vrot.lane.b32.xlu1 %v3137_v8, %s2830_s30  ;;  %v1273_v52 = vsel %vm659_vm3, %v3331_v51, 0.0 }
 0x795   :  { %1286 = vrot.lane.b32.xlu0 %v3127_v53, %s2830_s30 }
 0x798   :  { %1344 = vrot.lane.b32.xlu1 %v3125_v50, %s2830_s30 }
 0x79c   :  { %1342 = vrot.lane.b32.xlu1 %v3130_v54, %s2830_s30 }
 0x7b4   :  { %1271 = vadd.xlane.f32.xlu0 %v1270_v46 }
 0x7c0   :  { %1274 = vadd.xlane.f32.xlu1 %v1273_v52 }
 0x7ca   :  { %1409 = vrot.lane.b32.xlu0 %v3018_v29, %s2831_s16 }
 0x7ce   :  { %1407 = vrot.lane.b32.xlu0 %v3023_v36, %s2831_s16 }
 0x7d1   :  { %1475 = vrot.lane.b32.xlu1 %v3046_v56, %s2831_s16 }
 0x7d2   :  { %1405 = vrot.lane.b32.xlu0 %v3037_v48, %s2831_s16 }
 0x7d5   :  { %1473 = vrot.lane.b32.xlu1 %v3059_v61, %s2831_s16 }
 0x7d6   :  { %1403 = vrot.lane.b32.xlu0 %v3057_v60, %s2831_s16 }
 0x7d9   :  { %1471 = vrot.lane.b32.xlu1 %v3073_v7, %s2831_s16 }
 0x7da   :  { %1401 = vrot.lane.b32.xlu0 %v3102_v20, %s2831_s16 }
 0x7dd   :  { %1469 = vrot.lane.b32.xlu1 %v3085_v3, %s2831_s16 }
 0x7e1   :  { %1467 = vrot.lane.b32.xlu1 %v3100_v17, %s2831_s16  ;;  %s2833_s16 = smov [#allocation2]  }
 0x800   :  { %v1266_v55 = vpop.xlane.xlu0 %1265 }
 0x801   :  { %2779 = vrcp.f32 %v1266_v55  ;;  %v2209_v55 = vld [vmem:[%s3559_s8 + $0x30] sm:$0xff] }
 0x804   :  { %v1269_v29 = vpop.xlane.xlu1 %1268  ;;  %v1293_v36 = vpop.permute.xlu0 %1292 }
 0x805   :  { %2781 = vrcp.f32 %v1269_v29  ;;  %2569 = vmatpush3.bf16.msra.mxu0 %v1293_v36 }
 0x806   :  { %2570 = vmatprep.subr.bf16.mxu0 %v2825_v14 }
 0x808   :  { %v1349_v48 = vpop.permute.xlu1 %1348  ;;  %v1289_v60 = vpop.permute.xlu0 %1288 }
 0x809   :  { %2581 = vmatpush3.bf16.msra.mxu1 %v1349_v48 }
 0x80a   :  { %2582 = vmatprep.subr.bf16.mxu1 %v2825_v14 }
 0x80c   :  { %v1291_v56 = vpop.permute.xlu1 %1290  ;;  %v1287_v57 = vpop.permute.xlu0 %1286 }
 0x80d   :  { %2571 = vmatpush3.bf16.msra.mxu0 %v1291_v56 }
 0x80e   :  { %2572 = vmatprep.subr.bf16.mxu0 %v2825_v14  ;;  %v2780_v61 = vpop.eup %2779 }
 0x80f   :  { %v1277_v17 = vmul.f32 %v2780_v61, %v2772_v24 }
 0x810   :  { %v1347_v7 = vpop.permute.xlu1 %1346 }
 0x811   :  { %2573 = vmatpush3.bf16.msra.mxu0 %v1289_v60  ;;  %2583 = vmatpush3.bf16.msra.mxu1 %v1347_v7  ;;  %v2210_v60 = vld [vmem:[%s3559_s8 + $0x38] sm:$0xff]  ;;  %s2832_s8 = smov 32  }
 0x812   :  { %v2782_v3 = vpop.eup %2781  ;;  %2584 = vmatprep.subr.bf16.mxu1 %v2825_v14  ;;  %2574 = vmatprep.subr.bf16.mxu0 %v2825_v14 }
 0x813   :  { %v1279_v20 = vmul.f32 %v2782_v3, %v2774_v26 }
 0x814   :  { %v1345_v58 = vpop.permute.xlu1 %1344 }
 0x815   :  { %2575 = vmatpush3.bf16.msra.mxu0 %v1287_v57  ;;  %2585 = vmatpush3.bf16.msra.mxu1 %v1345_v58  ;;  %v1284_v59 = vpack.c.bf16 %v1279_v20, %v1277_v17 }
 0x816   :  { %2586 = vmatprep.subr.bf16.mxu1 %v2825_v14  ;;  %2592 = vmatprep.subr.bf16.mxu0 %v2825_v14 }
 0x818   :  { %v1343_v62 = vpop.permute.xlu1 %1342  ;;  %2577 = vmatmul.mubr.msk.bf16.vlgmr.msra.gmra.mxu0 %vm659_vm3, %v1284_v59 }
 0x819   :  { %2587 = vmatpush3.bf16.msra.mxu1 %v1343_v62  ;;  %2600 = vmatprep.mubr.msk.bf16.mxu0 %vm2826_vm2, %v2825_v14 }
 0x81a   :  { %2604 = vmatprep.subr.bf16.mxu1 %v2825_v14 }
 0x83d   :  { %v1272_v63 = vpop.xlane.xlu0 %1271 }
 0x83e   :  { %2783 = vrcp.f32 %v1272_v63 }
 0x841   :  { %v1410_v5 = vpop.permute.xlu0 %1409 }
 0x842   :  { %v1424_v9 = vsel %vm546_vm1, %v1410_v5, 0 }
 0x843   :  { %2593 = vmatpush3.bf16.xpose.msra.mxu0 %v1424_v9 }
 0x844   :  { %2594 = vmatprep.subr.bf16.mxu0 %v2825_v14 }
 0x845   :  { %v1408_v10 = vpop.permute.xlu0 %1407 }
 0x846   :  { %v1421_v1 = vsel %vm546_vm1, %v1408_v10, 0 }
 0x849   :  { %v1275_v6 = vpop.xlane.xlu1 %1274  ;;  %v1406_v2 = vpop.permute.xlu0 %1405 }
 0x84a   :  { %2785 = vrcp.f32 %v1275_v6  ;;  %v1418_v11 = vsel %vm546_vm1, %v1406_v2, 0 }
 0x84b   :  { %2595 = vmatpush3.bf16.xpose.msra.mxu0 %v1421_v1  ;;  %v2784_v12 = vpop.eup %2783 }
 0x84c   :  { %2596 = vmatprep.subr.bf16.mxu0 %v2825_v14  ;;  %v1281_v0 = vmul.f32 %v2784_v12, %v3327_v43 }
 0x84d   :  { %v1404_v15 = vpop.permute.xlu0 %1403  ;;  %v1476_v18 = vpop.permute.xlu1 %1475 }
 0x84e   :  { %v1415_v19 = vsel %vm546_vm1, %v1404_v15, 0  ;;  %v1490_v22 = vsel %vm546_vm1, %v1476_v18, 0 }
 0x851   :  { %v1474_v23 = vpop.permute.xlu1 %1473  ;;  %v1402_v24 = vpop.permute.xlu0 %1401 }
 0x852   :  { %v1487_v25 = vsel %vm546_vm1, %v1474_v23, 0 }
 0x853   :  { %2597 = vmatpush3.bf16.xpose.msra.mxu0 %v1418_v11 }
 0x854   :  { %2598 = vmatprep.subr.bf16.mxu0 %v2825_v14 }
 0x855   :  { %v1472_v26 = vpop.permute.xlu1 %1471 }
 0x856   :  { %v1484_v27 = vsel %vm546_vm1, %v1472_v26, 0 }
 0x857   :  { %v2786_v13 = vpop.eup %2785 }
 0x858   :  { %v1283_v16 = vmul.f32 %v2786_v13, %v3331_v51 }
 0x859   :  { %v1470_v28 = vpop.permute.xlu1 %1469 }
 0x85a   :  { %v1285_v21 = vpack.c.bf16 %v1283_v16, %v1281_v0  ;;  %v1481_v30 = vsel %vm546_vm1, %v1470_v28, 0 }
 0x85b   :  { %2599 = vmatpush3.bf16.xpose.msra.mxu0 %v1415_v19 }
 0x85c   :  { %2589 = vmatmul.mubr.msk.bf16.vlgmr.msra.gmra.mxu1 %vm659_vm3, %v1285_v21  ;;  %2616 = vmatprep.subr.bf16.mxu0 %v2825_v14 }
 0x85d   :  { %2605 = vmatpush3.bf16.xpose.msra.mxu1 %v1490_v22  ;;  %2612 = vmatprep.mubr.msk.bf16.mxu1 %vm2826_vm2, %v2825_v14  ;;  %v1468_v31 = vpop.permute.xlu1 %1467 }
 0x85e   :  { %2606 = vmatprep.subr.bf16.mxu1 %v2825_v14 }
 0x862   :  { %2601 = vmatmul.mubr.msk.bf16.vlgmr.msra.gmra.mxu0 %vm546_vm1, %v1402_v24 }
 0x863   :  { %2624 = vmatprep.mubr.msk.bf16.mxu0 %vm2826_vm2, %v2825_v14 }
 0x865   :  { %2607 = vmatpush3.bf16.xpose.msra.mxu1 %v1487_v25 }
 0x866   :  { %2608 = vmatprep.subr.bf16.mxu1 %v2825_v14 }
 0x86d   :  { %2609 = vmatpush3.bf16.xpose.msra.mxu1 %v1484_v27 }
 0x86e   :  { %2610 = vmatprep.subr.bf16.mxu1 %v2825_v14 }
 0x875   :  { %2611 = vmatpush3.bf16.xpose.msra.mxu1 %v1481_v30 }
 0x876   :  { %2628 = vmatprep.subr.bf16.mxu1 %v2825_v14 }
 0x87c   :  { %2613 = vmatmul.mubr.msk.bf16.vlgmr.msra.gmra.mxu1 %vm546_vm1, %v1468_v31 }
 0x87d   :  { %2636 = vmatprep.mubr.msk.bf16.mxu1 %vm2826_vm2, %v2825_v14 }
 0x8d8   :  { %v3383_v32 = vpop.f32.mrf.mxu0 }
 0x8da   :  { %v2578_v34 = vpop.f32.mrf.mxu0 }
 0x8dc   :  { %v3385_v40 = vpop.f32.mrf.mxu0 }
 0x8de   :  { %v2579_v43 = vpop.f32.mrf.mxu0 }
 0x91c   :  { %v3387_v46 = vpop.f32.mrf.mxu1 }
 0x91e   :  { %v2590_v51 = vpop.f32.mrf.mxu1 }
 0x920   :  { %v3389_v52 = vpop.f32.mrf.mxu1 }
 0x922   :  { %v2591_v29 = vpop.f32.mrf.mxu1  ;;  %v1460_v36 = vpop.f32.mrf.mxu0 }
 0x923   :  { %v1461_v48 = vadd.f32 %v2209_v55, %v1460_v36  ;;  %v2719_v29 = vld [vmem:[%s3560_s9 + $0x38] sm:$0xff]   ;;  %v2720_v36 = vld [vmem:[%s3560_s9 + $0x30] sm:$0xff]  }
 0x924   :  { %v2602_v56 = vpop.f32.mrf.mxu0 }
 0x925   :  { %v1533_v61 = vsel %vm659_vm3, %v1461_v48, -inf  ;;  %v2721_v56 = vld [vmem:[%s3560_s9 + $0x28] sm:$0xff]  }
 0x926   :  { %1534 = vmax.xlane.f32.xlu0 %v1533_v61  ;;  %v1463_v7 = vpop.f32.mrf.mxu0 }
 0x927   :  { %v1464_v3 = vadd.f32 %v2210_v60, %v1463_v7  ;;  %v2722_v7 = vld [vmem:[%s3560_s9 + $0x20] sm:$0xff]  }
 0x928   :  { %v2603_v17 = vpop.f32.mrf.mxu0 }
 0x929   :  { %v1536_v20 = vsel %vm659_vm3, %v1464_v3, -inf  ;;  %v2723_v17 = vld [vmem:[%s3560_s9 + $0x18] sm:$0xff]  }
 0x92a   :  { %1537 = vmax.xlane.f32.xlu1 %v1536_v20  ;;  %v2724_v20 = vld [vmem:[%s3560_s9 + $0x10] sm:$0xff]  }
 0x93c   :  { %v1526_v57 = vpop.f32.mrf.mxu1 }
 0x93d   :  { %v1527_v58 = vadd.f32 %v2209_v55, %v1526_v57  ;;  %v2725_v57 = vld [vmem:[%s3560_s9 + $0x8] sm:$0xff]  }
 0x93e   :  { %v2614_v59 = vpop.f32.mrf.mxu1 }
 0x93f   :  { %v1539_v62 = vsel %vm659_vm3, %v1527_v58, -inf  ;;  %v2726_v59 = vld [vmem:[%s3560_s9] sm:$0xff]   ;;  %s2145_s9 = sshll.u32 %s2833_s16, 4  ;;  %s2146_s9 = int_to_ptr.vmem [resolvable:$true] %s2145_s9 }
 0x940   :  { %1540 = vmax.xlane.f32.xlu0 %v1539_v62  ;;  %v1529_v63 = vpop.f32.mrf.mxu1  ;;  %p2808_p1 = scmp.lt.s32.totalorder %s2146_s9, %s2146_s9 }
 0x941   :  { %v1530_v5 = vadd.f32 %v2210_v60, %v1529_v63 }
 0x942   :  { %v2615_v9 = vpop.f32.mrf.mxu1 }
 0x943   :  { %v1542_v10 = vsel %vm659_vm3, %v1530_v5, -inf }
 0x944   :  { %1543 = vmax.xlane.f32.xlu0 %v1542_v10 }
 0x9af   :  { %v1535_v6 = vpop.xlane.xlu0 %1534 }
 0x9b0   :  { %v1545_v1 = vsub.f32 %v1461_v48, %v1535_v6 }
 0x9b2   :  { %v1549_v2 = vmul.f32 1.442695, %v1545_v1 }
 0x9b3   :  { %v1538_v11 = vpop.xlane.xlu1 %1537 }
 0x9b4   :  { %2787 = vpow2.f32 %v1549_v2  ;;  %v1546_v12 = vsub.f32 %v1464_v3, %v1538_v11 }
 0x9b6   :  { %v1551_v13 = vmul.f32 1.442695, %v1546_v12 }
 0x9b8   :  { %2789 = vpow2.f32 %v1551_v13 }
 0x9c1   :  { %v3401_v15 = vpop.eup %2787 }
 0x9c2   :  { %v1557_v0 = vsel %vm659_vm3, %v3401_v15, 0.0 }
 0x9c3   :  { %1558 = vadd.xlane.f32.xlu0 %v1557_v0 }
 0x9c5   :  { %v2790_v16 = vpop.eup %2789 }
 0x9c6   :  { %v1560_v18 = vsel %vm659_vm3, %v2790_v16, 0.0 }
 0x9c7   :  { %1561 = vadd.xlane.f32.xlu1 %v1560_v18 }
 0x9c9   :  { %v1541_v19 = vpop.xlane.xlu0 %1540 }
 0x9ca   :  { %v1547_v21 = vsub.f32 %v1527_v58, %v1541_v19 }
 0x9cc   :  { %v1553_v22 = vmul.f32 1.442695, %v1547_v21 }
 0x9cd   :  { %v1544_v23 = vpop.xlane.xlu0 %1543 }
 0x9ce   :  { %2791 = vpow2.f32 %v1553_v22  ;;  %v1548_v24 = vsub.f32 %v1530_v5, %v1544_v23  ;;  %v2727_v5 = vld [vmem:[%s3562_s11 + $0x18] sm:$0xff]  }
 0x9d0   :  { %v1555_v25 = vmul.f32 1.442695, %v1548_v24 }
 0x9d2   :  { %2793 = vpow2.f32 %v1555_v25 }
 0x9d8   :  { %1641 = vrot.lane.b32.xlu1 %v3135_v4, %s2832_s8 }
 0x9d9   :  { %1585 = vrot.lane.b32.xlu0 %v3115_v33, %s2832_s8 }
 0x9db   :  { %v2792_v26 = vpop.eup %2791 }
 0x9dc   :  { %1583 = vrot.lane.b32.xlu1 %v3117_v39, %s2832_s8  ;;  %v1563_v4 = vsel %vm659_vm3, %v2792_v26, 0.0 }
 0x9dd   :  { %1581 = vrot.lane.b32.xlu0 %v3121_v45, %s2832_s8 }
 0x9df   :  { %v2794_v33 = vpop.eup %2793 }
 0x9e0   :  { %1639 = vrot.lane.b32.xlu1 %v3137_v8, %s2832_s8  ;;  %v1566_v39 = vsel %vm659_vm3, %v2794_v33, 0.0 }
 0x9e4   :  { %1637 = vrot.lane.b32.xlu1 %v3125_v50, %s2832_s8 }
 0x9fc   :  { %1564 = vadd.xlane.f32.xlu0 %v1563_v4 }
 0xa08   :  { %1567 = vadd.xlane.f32.xlu1 %v1566_v39 }
 0xa12   :  { %1579 = vrot.lane.b32.xlu0 %v3127_v53, %s2832_s8 }
 0xa16   :  { %1695 = vrot.lane.b32.xlu0 %v3291_v37, %s2832_s8 }
 0xa19   :  { %1635 = vrot.lane.b32.xlu1 %v3130_v54, %s2832_s8 }
 0xa1a   :  { %1699 = vrot.lane.b32.xlu0 %v3295_v44, %s2832_s8 }
 0xa1d   :  { %1697 = vrot.lane.b32.xlu1 %v3293_v42, %s2832_s8 }
 0xa1e   :  { %1711 = vrot.lane.b32.xlu0 %v3383_v32, %s2830_s30 }
 0xa21   :  { %1701 = vrot.lane.b32.xlu1 %v3297_v49, %s2832_s8 }
 0xa22   :  { %1715 = vrot.lane.b32.xlu0 %v3387_v46, %s2830_s30 }
 0xa25   :  { %1713 = vrot.lane.b32.xlu1 %v3385_v40, %s2830_s30 }
 0xa29   :  { %1717 = vrot.lane.b32.xlu1 %v3389_v52, %s2830_s30 }
 0xa4c   :  { %v1559_v45 = vpop.xlane.xlu0 %1558 }
 0xa50   :  { %v1562_v50 = vpop.xlane.xlu1 %1561  ;;  %v1586_v53 = vpop.permute.xlu0 %1585 }
 0xa51   :  { %2617 = vmatpush3.bf16.msra.mxu0 %v1586_v53  ;;  %2795 = vrcp.f32 %v1562_v50 }
 0xa52   :  { %2618 = vmatprep.subr.bf16.mxu0 %v2825_v14  ;;  %2797 = vrcp.f32 %v1559_v45 }
 0xa54   :  { %v1642_v54 = vpop.permute.xlu1 %1641  ;;  %v1582_v37 = vpop.permute.xlu0 %1581 }
 0xa55   :  { %2629 = vmatpush3.bf16.msra.mxu1 %v1642_v54 }
 0xa56   :  { %2630 = vmatprep.subr.bf16.mxu1 %v2825_v14 }
 0xa58   :  { %v1584_v8 = vpop.permute.xlu1 %1583 }
 0xa59   :  { %2619 = vmatpush3.bf16.msra.mxu0 %v1584_v8 }
 0xa5a   :  { %2620 = vmatprep.subr.bf16.mxu0 %v2825_v14 }
 0xa5c   :  { %v1640_v42 = vpop.permute.xlu1 %1639 }
 0xa5d   :  { %2621 = vmatpush3.bf16.msra.mxu0 %v1582_v37  ;;  %2631 = vmatpush3.bf16.msra.mxu1 %v1640_v42 }
 0xa5e   :  { %2632 = vmatprep.subr.bf16.mxu1 %v2825_v14  ;;  %2622 = vmatprep.subr.bf16.mxu0 %v2825_v14  ;;  %v2796_v49 = vpop.eup %2795 }
 0xa5f   :  { %v2798_v28 = vpop.eup %2797  ;;  %v1572_v30 = vmul.f32 %v2796_v49, %v2790_v16 }
 0xa60   :  { %v1638_v44 = vpop.permute.xlu1 %1637  ;;  %v1570_v32 = vmul.f32 %v2798_v28, %v3401_v15 }
 0xa61   :  { %2633 = vmatpush3.bf16.msra.mxu1 %v1638_v44 }
 0xa62   :  { %2634 = vmatprep.subr.bf16.mxu1 %v2825_v14  ;;  %v1577_v34 = vpack.c.bf16 %v1572_v30, %v1570_v32 }
 0xa85   :  { %v1565_v27 = vpop.xlane.xlu0 %1564 }
 0xa86   :  { %2799 = vrcp.f32 %v1565_v27 }
 0xa89   :  { %v1580_v31 = vpop.permute.xlu0 %1579 }
 0xa8a   :  { %2623 = vmatpush3.bf16.msra.mxu0 %v1580_v31 }
 0xa8b   :  { %2640 = vmatprep.subr.bf16.mxu0 %v2719_v29 }
 0xa8d   :  { %2625 = vmatmul.mubr.msk.bf16.vlgmr.msra.gmra.mxu0 %vm659_vm3, %v1577_v34  ;;  %v1696_v10 = vpop.permute.xlu0 %1695 }
 0xa8e   :  { %2641 = vmatpush3.bf16.msra.mxu0 %v2719_v29  ;;  %v1739_v15 = vsel %vm206_vm0, %v3199_v35, %v1696_v10  ;;  %v2729_v29 = vld [vmem:[%s3562_s11 + $0x8] sm:$0xff]   ;;  %v2735_v10 = vld [vmem:[%s3564_s13 + $0x18] sm:$0xff]  }
 0xa8f   :  { %2642 = vmatprep.subr.bf16.mxu0 %v2720_v36 }
 0xa91   :  { %v1568_v40 = vpop.xlane.xlu1 %1567  ;;  %v1700_v1 = vpop.permute.xlu0 %1699 }
 0xa92   :  { %2801 = vrcp.f32 %v1568_v40  ;;  %2643 = vmatpush3.bf16.msra.mxu0 %v2720_v36  ;;  %v1741_v37 = vsel %vm206_vm0, %v3203_v41, %v1700_v1  ;;  %v2730_v36 = vld [vmem:[%s3562_s11] sm:$0xff]   ;;  %v2737_v1 = vld [vmem:[%s3564_s13 + $0x8] sm:$0xff]  }
 0xa93   :  { %v2800_v46 = vpop.eup %2799  ;;  %2644 = vmatprep.subr.bf16.mxu0 %v2721_v56 }
 0xa94   :  { %v1574_v51 = vmul.f32 %v2800_v46, %v2792_v26 }
 0xa95   :  { %v1636_v43 = vpop.permute.xlu1 %1635  ;;  %v1712_v11 = vpop.permute.xlu0 %1711 }
 0xa96   :  { %2635 = vmatpush3.bf16.msra.mxu1 %v1636_v43  ;;  %2645 = vmatpush3.bf16.msra.mxu0 %v2721_v56  ;;  %v1743_v0 = vsel %vm659_vm3, %v1739_v15, %v1712_v11  ;;  %v2224_v11 = vld [vmem:[%s3563_s12] ss:$0 sm:$0xff] }
 0xa97   :  { %2646 = vmatprep.subr.bf16.mxu0 %v2722_v7  ;;  %2660 = vmatprep.subr.bf16.mxu1 %v2727_v5 }
 0xa99   :  { %v1698_v6 = vpop.permute.xlu1 %1697  ;;  %v1716_v13 = vpop.permute.xlu0 %1715 }
 0xa9a   :  { %2647 = vmatpush3.bf16.msra.mxu0 %v2722_v7  ;;  %v1740_v22 = vsel %vm206_vm0, %v3201_v38, %v1698_v6  ;;  %v1745_v38 = vsel %vm659_vm3, %v1741_v37, %v1716_v13  ;;  %v2215_v7 = vld [vmem:[%s3561_s10] ss:$0 sm:$0xff]  ;;  %v2736_v6 = vld [vmem:[%s3564_s13 + $0x10] sm:$0xff]  }
 0xa9b   :  { %2648 = vmatprep.subr.bf16.mxu0 %v2723_v17 }
 0xa9d   :  { %v1702_v2 = vpop.permute.xlu1 %1701 }
 0xa9e   :  { %2649 = vmatpush3.bf16.msra.mxu0 %v2723_v17  ;;  %v1742_v27 = vsel %vm206_vm0, %v3208_v47, %v1702_v2  ;;  %v2728_v47 = vld [vmem:[%s3562_s11 + $0x10] sm:$0xff]   ;;  %v2738_v2 = vld [vmem:[%s3564_s13] sm:$0xff]  }
 0xa9f   :  { %v2802_v14 = vpop.eup %2801  ;;  %2650 = vmatprep.subr.bf16.mxu0 %v2724_v20 }
 0xaa0   :  { %v1576_v52 = vmul.f32 %v2802_v14, %v2794_v33 }
 0xaa1   :  { %v1714_v12 = vpop.permute.xlu1 %1713 }
 0xaa2   :  { %v1578_v55 = vpack.c.bf16 %v1576_v52, %v1574_v51  ;;  %2651 = vmatpush3.bf16.msra.mxu0 %v2724_v20  ;;  %v1744_v23 = vsel %vm659_vm3, %v1740_v22, %v1714_v12 }
 0xaa3   :  { %2652 = vmatprep.subr.bf16.mxu0 %v2725_v57 }
 0xaa4   :  { %2637 = vmatmul.mubr.msk.bf16.vlgmr.msra.gmra.mxu1 %vm659_vm3, %v1578_v55 }
 0xaa5   :  { %2661 = vmatpush3.bf16.msra.mxu1 %v2727_v5  ;;  %v1718_v16 = vpop.permute.xlu1 %1717  ;;  %v2733_v5 = vld [vmem:[%s3564_s13 + $0x28] sm:$0xff]  }
 0xaa6   :  { %2653 = vmatpush3.bf16.msra.mxu0 %v2725_v57  ;;  %v1746_v28 = vsel %vm659_vm3, %v1742_v27, %v1718_v16  ;;  %2662 = vmatprep.subr.bf16.mxu1 %v2728_v47 }
 0xaa7   :  { %2654 = vmatprep.subr.bf16.mxu0 %v2726_v59 }
 0xaa9   :  { %2663 = vmatpush3.bf16.msra.mxu1 %v2728_v47 }
 0xaaa   :  { %2655 = vmatpush3.bf16.msra.mxu0 %v2726_v59  ;;  %2664 = vmatprep.subr.bf16.mxu1 %v2729_v29 }
 0xaad   :  { %2665 = vmatpush3.bf16.msra.mxu1 %v2729_v29 }
 0xaae   :  { %2666 = vmatprep.subr.bf16.mxu1 %v2730_v36 }
 0xab1   :  { %2667 = vmatpush3.bf16.msra.mxu1 %v2730_v36 }
 0xb4d   :  { %v1628_v48 = vpop.f32.mrf.mxu0 }
 0xb4e   :  { %1727 = vrot.lane.b32.xlu0 %v1628_v48, %s2828_s25  ;;  %v2731_v48 = vld [vmem:[%s3564_s13 + $0x38] sm:$0xff]  }
 0xb4f   :  { %v2626_v60 = vpop.f32.mrf.mxu0  ;;  %2672 = vmatprep.subr.bf16.mxu1 %v2731_v48 }
 0xb51   :  { %v1631_v61 = vpop.f32.mrf.mxu0 }
 0xb52   :  { %1729 = vrot.lane.b32.xlu1 %v1631_v61, %s2828_s25 }
 0xb53   :  { %v2627_v3 = vpop.f32.mrf.mxu0 }
 0xb64   :  { %v1684_v58 = vpop.f32.mrf.mxu1 }
 0xb65   :  { %1731 = vrot.lane.b32.xlu0 %v1684_v58, %s2828_s25 }
 0xb66   :  { %v2638_v62 = vpop.f32.mrf.mxu1 }
 0xb68   :  { %v1687_v63 = vpop.f32.mrf.mxu1 }
 0xb69   :  { %1733 = vrot.lane.b32.xlu1 %v1687_v63, %s2828_s25  ;;  %v2732_v63 = vld [vmem:[%s3564_s13 + $0x30] sm:$0xff]  }
 0xb6a   :  { %v2639_v9 = vpop.f32.mrf.mxu1 }
 0xb6b   :  { %v2734_v9 = vld [vmem:[%s3564_s13 + $0x20] sm:$0xff]  }
 0xbc0   :  { %v1728_v18 = vpop.permute.xlu0 %1727 }
 0xbc1   :  { %v1748_v19 = vsel %vm1747_vm4, %v1743_v0, %v1728_v18 }
 0xbc2   :  { %v1752_v21 = vadd.f32 3.0, %v1748_v19 }
 0xbc4   :  { %v1756_v24 = vmax.f32 %v1752_v21, 0.0  ;;  %v1730_v25 = vpop.permute.xlu1 %1729 }
 0xbc5   :  { %v1749_v26 = vsel %vm1747_vm4, %v1744_v23, %v1730_v25 }
 0xbc6   :  { %v1760_v4 = vmin.f32 %v1756_v24, 6.0  ;;  %v1753_v33 = vadd.f32 3.0, %v1749_v26 }
 0xbc8   :  { %v1757_v39 = vmax.f32 %v1753_v33, 0.0  ;;  %v1764_v35 = vmul.f32 %v1760_v4, %v1748_v19 }
 0xbca   :  { %v1761_v45 = vmin.f32 %v1757_v39, 6.0  ;;  %v1768_v53 = vmul.f32 0.16666667, %v1764_v35 }
 0xbcc   :  { %v1765_v50 = vmul.f32 %v1761_v45, %v1749_v26 }
 0xbce   :  { %v1769_v54 = vmul.f32 0.16666667, %v1765_v50 }
 0xbd0   :  { %v1772_v8 = vpack.c.bf16 %v1769_v54, %v1768_v53 }
 0xbd2   :  { %2656 = vmatprep.mubr.bf16.mxu0 %v1772_v8 }
 0xbd7   :  { %v1732_v42 = vpop.permute.xlu0 %1731 }
 0xbd8   :  { %v1750_v44 = vsel %vm1747_vm4, %v1745_v38, %v1732_v42 }
 0xbd9   :  { %v1754_v49 = vadd.f32 3.0, %v1750_v44 }
 0xbdb   :  { %v1758_v30 = vmax.f32 %v1754_v49, 0.0  ;;  %v1734_v31 = vpop.permute.xlu1 %1733 }
 0xbdc   :  { %v1751_v32 = vsel %vm1747_vm4, %v1746_v28, %v1734_v31  ;;  %v2231_v31 = vld [vmem:[%s3565_s14] ss:$0 sm:$0xff]  ;;  %s2803_s14 = scalar_lea.vmem %s2146_s9, 512 }
 0xbdd   :  { %v1762_v34 = vmin.f32 %v1758_v30, 6.0  ;;  %v1755_v40 = vadd.f32 3.0, %v1751_v32  ;;  %p2804_p0 = scmp.ne.s32.totalorder %s2146_s9, %s2803_s14  ;;  %p2809_p2 = scmp.lt.s32.totalorder %s2803_s14, %s2803_s14 }
 0xbdf   :  { %v1759_v43 = vmax.f32 %v1755_v40, 0.0  ;;  %v1766_v46 = vmul.f32 %v1762_v34, %v1750_v44  ;;  %p2810_p3 = por %p2809_p2, %p2808_p1 }
 0xbe1   :  { %v1763_v41 = vmin.f32 %v1759_v43, 6.0  ;;  %v1770_v51 = vmul.f32 0.16666667, %v1766_v46  ;;  %p2811_p4 = pnand %p2810_p3, %p2804_p0 }
 0xbe3   :  { %v1767_v14 = vmul.f32 %v1763_v41, %v1751_v32 }
 0xbe5   :  { %v1771_v52 = vmul.f32 0.16666667, %v1767_v14 }
 0xbe7   :  { %v1773_v55 = vpack.c.bf16 %v1771_v52, %v1770_v51 }
 0xbe9   :  { %2657 = vmatmul.mubr.bf16.vlgmr.msra.gmra.mxu0 %v1773_v55 }
 0xca9   :  { %v2658_v56 = vpop.f32.mrf.mxu0 }
 0xcaa   :  { %v3505_v58 = vadd.f32 %v2658_v56, %v2215_v7 }
 0xcab   :  { %v1879_v60 = vpop.f32.mrf.mxu0 }
 0xcac   :  { %v3501_v20 = vadd.f32 %v2215_v7, %v1879_v60 }
 0xcad   :  { %v2659_v61 = vpop.f32.mrf.mxu0 }
 0xcae   :  { %v3499_v3 = vadd.f32 %v2659_v61, %v2215_v7 }
 0xcaf   :  { %v1882_v17 = vpop.f32.mrf.mxu0 }
 0xcb0   :  { %v3503_v57 = vadd.f32 %v2215_v7, %v1882_v17  ;;  %v1895_v62 = vpack.c.bf16 %v3499_v3, %v3505_v58 }
 0xcb2   :  { %v1894_v59 = vpack.c.bf16 %v3503_v57, %v3501_v20 }
 0xcb4   :  { %2668 = vmatprep.mubr.msk.bf16.mxu1 %vm659_vm3, %v1894_v59 }
 0xcb5   :  { %2669 = vmatmul.mubr.msk.bf16.vlgmr.msra.gmra.mxu1 %vm659_vm3, %v1895_v62 }
 0xcb6   :  { %2673 = vmatpush3.bf16.msra.mxu1 %v2731_v48 }
 0xcb7   :  { %2674 = vmatprep.subr.bf16.mxu1 %v2732_v63 }
 0xcba   :  { %2675 = vmatpush3.bf16.msra.mxu1 %v2732_v63 }
 0xcbb   :  { %2676 = vmatprep.subr.bf16.mxu1 %v2733_v5 }
 0xcbe   :  { %2677 = vmatpush3.bf16.msra.mxu1 %v2733_v5 }
 0xcbf   :  { %2678 = vmatprep.subr.bf16.mxu1 %v2734_v9 }
 0xcc2   :  { %2679 = vmatpush3.bf16.msra.mxu1 %v2734_v9 }
 0xcc3   :  { %2680 = vmatprep.subr.bf16.mxu1 %v2735_v10 }
 0xcc6   :  { %2681 = vmatpush3.bf16.msra.mxu1 %v2735_v10 }
 0xcc7   :  { %2682 = vmatprep.subr.bf16.mxu1 %v2736_v6 }
 0xcca   :  { %2683 = vmatpush3.bf16.msra.mxu1 %v2736_v6 }
 0xccb   :  { %2684 = vmatprep.subr.bf16.mxu1 %v2737_v1 }
 0xcce   :  { %2685 = vmatpush3.bf16.msra.mxu1 %v2737_v1 }
 0xccf   :  { %2686 = vmatprep.subr.bf16.mxu1 %v2738_v2 }
 0xcd2   :  { %2687 = vmatpush3.bf16.msra.mxu1 %v2738_v2 }
 0xd75   :  { %v2670_v12 = vpop.f32.mrf.mxu1 }
 0xd76   :  { %v1984_v13 = vadd.f32 %v2670_v12, %v2224_v11 }
 0xd77   :  { %v1975_v15 = vpop.f32.mrf.mxu1 }
 0xd78   :  { %v1992_v0 = vadd.f32 3.0, %v1984_v13  ;;  %v1976_v16 = vadd.f32 %v2224_v11, %v1975_v15 }
 0xd79   :  { %v2671_v18 = vpop.f32.mrf.mxu1 }
 0xd7a   :  { %v1990_v19 = vadd.f32 3.0, %v1976_v16  ;;  %v1987_v21 = vadd.f32 %v2671_v18, %v2224_v11  ;;  %v1996_v22 = vmax.f32 %v1992_v0, 0.0 }
 0xd7b   :  { %v1978_v23 = vpop.f32.mrf.mxu1 }
 0xd7c   :  { %v1994_v24 = vmax.f32 %v1990_v19, 0.0  ;;  %v1993_v25 = vadd.f32 3.0, %v1987_v21  ;;  %v1979_v26 = vadd.f32 %v2224_v11, %v1978_v23  ;;  %v2000_v35 = vmin.f32 %v1996_v22, 6.0 }
 0xd7e   :  { %v1998_v4 = vmin.f32 %v1994_v24, 6.0  ;;  %v1997_v33 = vmax.f32 %v1993_v25, 0.0  ;;  %v1991_v39 = vadd.f32 3.0, %v1979_v26  ;;  %v2004_v37 = vmul.f32 %v2000_v35, %v1984_v13 }
 0xd80   :  { %v2001_v45 = vmin.f32 %v1997_v33, 6.0  ;;  %v1995_v50 = vmax.f32 %v1991_v39, 0.0  ;;  %v2002_v53 = vmul.f32 %v1998_v4, %v1976_v16  ;;  %v2008_v27 = vmul.f32 0.16666667, %v2004_v37 }
 0xd82   :  { %v2005_v54 = vmul.f32 %v2001_v45, %v1987_v21  ;;  %v1999_v8 = vmin.f32 %v1995_v50, 6.0  ;;  %v2006_v44 = vmul.f32 0.16666667, %v2002_v53 }
 0xd84   :  { %v2003_v38 = vmul.f32 %v1999_v8, %v1979_v26  ;;  %v2009_v42 = vmul.f32 0.16666667, %v2005_v54 }
 0xd86   :  { %v2007_v49 = vmul.f32 0.16666667, %v2003_v38  ;;  %v2011_v30 = vpack.c.bf16 %v2009_v42, %v2008_v27 }
 0xd88   :  { %v2010_v28 = vpack.c.bf16 %v2007_v49, %v2006_v44 }
 0xd8a   :  { %2688 = vmatprep.mubr.bf16.mxu1 %v2010_v28 }
 0xd8b   :  { %2689 = vmatmul.mubr.bf16.vlgmr.msra.gmra.mxu1 %v2011_v30 }
 0xe4b   :  { %v2690_v32 = vpop.f32.mrf.mxu1 }
 0xe4c   :  { %v2126_v34 = vadd.f32 %v2690_v32, %v2231_v31 }
 0xe4d   :  { %v2117_v40 = vpop.f32.mrf.mxu1 }
 0xe4e   :  { %v2134_v43 = vadd.f32 %v2126_v34, %v3505_v58  ;;  %v2118_v46 = vadd.f32 %v2231_v31, %v2117_v40 }
 0xe4f   :  { %v2691_v41 = vpop.f32.mrf.mxu1 }
 0xe50   :  { %2138 = vst.msk [vmem:[#allocation2 + $0x10] sm:$0xff] %vm659_vm3, %v2134_v43  ;;  %v2132_v14 = vadd.f32 %v2118_v46, %v3501_v20  ;;  %v2129_v51 = vadd.f32 %v2691_v41, %v2231_v31 }
 0xe51   :  { %v2120_v52 = vpop.f32.mrf.mxu1 }
 0xe52   :  { %2136 = vst.msk [vmem:[#allocation2] sm:$0xff] %vm659_vm3, %v2132_v14  ;;  %v2135_v55 = vadd.f32 %v2129_v51, %v3499_v3  ;;  %v2121_v47 = vadd.f32 %v2231_v31, %v2120_v52 }
 0xe54   :  { %2139 = vst.msk [vmem:[#allocation2 + $0x18] sm:$0xff] %vm659_vm3, %v2135_v55  ;;  %v2133_v29 = vadd.f32 %v2121_v47, %v3503_v57 }
 0xe56   :  { %2137 = vst.msk [vmem:[#allocation2 + $0x8] sm:$0xff] %vm659_vm3, %v2133_v29 }
 0xe57   :  { %2814 = shalt.err (!%p2811_p4)
}
 0xe58   :  { %s2834_s25 = smov 128   ;;  %s2835_s2 = smov 8  }
 0xe59   :  { %2151 = dma.vmem_to_hbm [thread:$0]  %s2146_s9, 512, %s3566_s15, [#allocation3], %s2834_s25, %s2834_s25, %s2835_s2  }
 0xe5a   :  { %2823 = dma.done.wait [#allocation3], 512  }
 0xe5b   :  { %2824 = vsyncadd [#allocation3], 4294966784 }
 0xe5c   :  { %2155 = vsyncpa [#allocation3], 1 }

</bundles_post_ra>
